<compile_context>
chip_gen: v5e
topology: v5e:2x2
jax: 0.10.0
libtpu: 0.0.40
codegen_flags: <defaults>
</compile_context>

<pallas_src>
import jax
import jax.numpy as jnp
from jax.experimental import pallas as pl
from jax.experimental.pallas import tpu as pltpu

_F32 = jnp.float32


def _sigmoid(x):
    # sigmoid(x) == 0.5*tanh(0.5*x) + 0.5 : one EUP push instead of exp+recip;
    # the extra mul/add ride free in spare VALU slots.
    return 0.5 * jnp.tanh(0.5 * x) + 0.5


# ----------------------------------------------------------------------------
# Kernels
# ----------------------------------------------------------------------------
def _make_fused_kernel(hidden_size):
    H = hidden_size

    def kernel(x_ref, h_ref, c_ref, wx_ref, wh_ref, b_ref, hn_ref, cn_ref):
        # Two lane-dense MXU matmuls (N = 4H); diag terms already folded into
        # Wx/Wh by the wrapper, so there is no elementwise diag work here.
        pre = (jnp.dot(x_ref[...], wx_ref[...], preferred_element_type=_F32)
               + jnp.dot(h_ref[...], wh_ref[...], preferred_element_type=_F32)
               + b_ref[...])                                     # (bm, 4H) f32

        f_g = _sigmoid(pre[:, 0 * H:1 * H])      # forget
        i_g = _sigmoid(pre[:, 1 * H:2 * H])      # input
        g_g = jnp.tanh(pre[:, 2 * H:3 * H])      # gate (cell candidate)
        o_g = _sigmoid(pre[:, 3 * H:4 * H])      # output

        c_next = f_g * c_ref[...] + i_g * g_g
        hn_ref[...] = o_g * jnp.tanh(c_next)
        cn_ref[...] = c_next

    return kernel


def _make_lowrank_kernel(hidden_size, input_size, matmul_dtype):
    H, IN = hidden_size, input_size

    def kernel(x_ref, h_ref, c_ref, sx_ref, su_ref, tx_ref, tu_ref,
               dw_ref, du_ref, b_ref, hn_ref, cn_ref):
        # Stage 1 (gate-invariant, hoisted): zx = x@W, zu = h@U
        zx = jnp.dot(x_ref[...], sx_ref[...], preferred_element_type=_F32)
        zu = jnp.dot(h_ref[...], su_ref[...], preferred_element_type=_F32)
        # Stage 2: all four gates at once (lane-dense N = 4H)
        pre = (jnp.dot(zx.astype(matmul_dtype), tx_ref[...],
                       preferred_element_type=_F32)
               + jnp.dot(zu.astype(matmul_dtype), tu_ref[...],
                         preferred_element_type=_F32)
               + b_ref[...])                                     # (bm, 4H) f32

        x32 = x_ref[...].astype(_F32)
        h32 = h_ref[...].astype(_F32)
        dw, du = dw_ref[...], du_ref[...]
        bm = x32.shape[0]

        def gate_pre(t):
            lo = t * H
            g = pre[:, lo:lo + H] + h32 * du[:, lo:lo + H]
            xd = x32 * dw[:, t * IN:(t + 1) * IN]        # diag term, first IN lanes
            if H > IN:
                xd = jnp.concatenate(
                    [xd, jnp.zeros((bm, H - IN), _F32)], axis=1)
            return g + xd

        f_g = _sigmoid(gate_pre(0))
        i_g = _sigmoid(gate_pre(1))
        g_g = jnp.tanh(gate_pre(2))
        o_g = _sigmoid(gate_pre(3))

        c_next = f_g * c_ref[...] + i_g * g_g
        hn_ref[...] = o_g * jnp.tanh(c_next)
        cn_ref[...] = c_next

    return kernel


# ----------------------------------------------------------------------------
# Loop-invariant weight packing (hoist out of the per-step call; cache it)
# ----------------------------------------------------------------------------
def pack_params(params, *, input_size, hidden_size, wRank, uRanks,
                matmul_dtype=jnp.bfloat16, low_rank=False):
    """Pack module parameters once per weight update.  Returns a dict of arrays
    consumed by dual_diagonal_lstm_cell.  Assumes input_size <= hidden_size
    (as the torch module does)."""
    hp = jax.lax.Precision.HIGHEST
    IN, H = input_size, hidden_size
    Ws = [w.astype(_F32) for w in params["Ws"]]
    Us = [u.astype(_F32) for u in params["Us"]]
    b = jnp.concatenate([jnp.reshape(bb, (1, H)).astype(_F32)
                         for bb in params["biases"]], axis=1)        # (1, 4H)

    if not low_rank:
        # Full-rank gate weights with the "dual diagonal" folded in exactly:
        # pre = x@W + diag(W)*x  <=>  x @ (W with its (j,j) entries doubled).
        def fold_diag(M):
            r = min(M.shape[0], M.shape[1])
            idx = jnp.arange(r)
            return M.at[idx, idx].add(jnp.diagonal(M))

        Wf = [(jnp.dot(params["W"].astype(_F32), Ws[t], precision=hp)
               if wRank is not None else Ws[t]) for t in range(4)]
        Uf = [(jnp.dot(params["U"].astype(_F32), Us[t], precision=hp)
               if uRanks is not None else Us[t]) for t in range(4)]
        Wx = jnp.concatenate([fold_diag(m) for m in Wf], axis=1)     # (IN, 4H)
        Wh = jnp.concatenate([fold_diag(m) for m in Uf], axis=1)     # (H, 4H)
        return {"Wx": Wx.astype(matmul_dtype),
                "Wh": Wh.astype(matmul_dtype),
                "b": b}

    assert wRank is not None and uRanks is not None, (
        "low_rank packing requires both wRank and uRanks")
    W = params["W"].astype(_F32)                                     # (IN, wRank)
    U = params["U"].astype(_F32)                                     # (H, uRanks)
    Tx = jnp.concatenate(Ws, axis=1)                                 # (wRank, 4H)
    Tu = jnp.concatenate(Us, axis=1)                                 # (uRanks, 4H)
    # diag(W @ Ws_t)[j] = sum_k W[j,k] * Ws_t[k,j]  (never form the full product)
    dW = jnp.concatenate(
        [jnp.sum(W * Ws[t][:, :IN].T, axis=1) for t in range(4)])    # (4*IN,)
    dU = jnp.concatenate(
        [jnp.sum(U * Us[t].T, axis=1) for t in range(4)])            # (4*H,)
    return {"Sx": W.astype(matmul_dtype), "Su": U.astype(matmul_dtype),
            "Tx": Tx.astype(matmul_dtype), "Tu": Tu.astype(matmul_dtype),
            "dW": dW.reshape(1, -1), "dU": dU.reshape(1, -1), "b": b}


# ----------------------------------------------------------------------------
# pallas_call wrapper
# ----------------------------------------------------------------------------
def _pick_bm(batch, matmul_dtype):
    """Batch tile: big enough to amortize ~0.35us/step overhead and fill the
    MXU M dimension; multiple of 16 for bf16 (packed LHS vregs) / 8 for f32;
    keep >=2 grid steps when possible so a v7x megacore can shard both TCs."""
    align = 16 if matmul_dtype == jnp.bfloat16 else 8
    if batch <= align:
        return batch
    bm = min(256, batch)
    if (batch + bm - 1) // bm < 2:
        bm = max(align, (batch + 1) // 2)
    return ((bm + align - 1) // align) * align


def dual_diagonal_lstm_cell(x, h, c, packed):
    """Pallas-backed forward of myDualDiagonalLSTMCell.

    x: (B, input_size), h/c: (B, hidden_size), packed: output of pack_params.
    Returns (h_next, c_next) in float32.
    """
    # TODO(synk): the torch code's x.squeeze()/h.squeeze() batch==1 quirk is not
    # reproduced; standard (B, F) semantics are implemented.
    B, IN = x.shape
    H = h.shape[1]
    low_rank = "Sx" in packed
    md = (packed["Sx"] if low_rank else packed["Wx"]).dtype

    x = x.astype(md)          # bf16 activation I/O halves matmul-input DMA
    h = h.astype(md)
    c = c.astype(_F32)        # state / epilogue stay f32

    bm = _pick_bm(B, md)
    grid = ((B + bm - 1) // bm,)

    row_x = pl.BlockSpec((bm, IN), lambda i: (i, 0))
    row_h = pl.BlockSpec((bm, H), lambda i: (i, 0))

    def resident(shape):      # weights: constant index_map, stay in VMEM
        return pl.BlockSpec(shape, lambda i: (0, 0))

    if low_rank:
        kernel = _make_lowrank_kernel(H, IN, md)
        Kx = packed["Sx"].shape[1]
        Ku = packed["Su"].shape[1]
        in_specs = [row_x, row_h, row_h,
                    resident((IN, Kx)), resident((H, Ku)),
                    resident((Kx, 4 * H)), resident((Ku, 4 * H)),
                    resident((1, 4 * IN)), resident((1, 4 * H)),
                    resident((1, 4 * H))]
        operands = (x, h, c, packed["Sx"], packed["Su"], packed["Tx"],
                    packed["Tu"], packed["dW"], packed["dU"], packed["b"])
    else:
        kernel = _make_fused_kernel(H)
        in_specs = [row_x, row_h, row_h,
                    resident((IN, 4 * H)), resident((H, 4 * H)),
                    resident((1, 4 * H))]
        operands = (x, h, c, packed["Wx"], packed["Wh"], packed["b"])

    h_next, c_next = pl.pallas_call(
        kernel,
        grid=grid,
        in_specs=in_specs,
        out_specs=[row_h, row_h],
        out_shape=[jax.ShapeDtypeStruct((B, H), _F32),
                   jax.ShapeDtypeStruct((B, H), _F32)],
        compiler_params=pltpu.CompilerParams(
            dimension_semantics=("parallel",),        # batch tiles shard v7x TCs
            vmem_limit_bytes=32 * 1024 * 1024),       # v5e default is only 16 MiB
    )(*operands)
    return h_next, c_next


# ----------------------------------------------------------------------------
# Pure-JAX reference (mirrors the PyTorch module) and self-test
# ----------------------------------------------------------------------------
def ref_forward(x, h, c, params, *, wRank, uRanks):
    hp = jax.lax.Precision.HIGHEST
    B, IN = x.shape
    H = h.shape[1]
    pad = jnp.zeros((B, H - IN), _F32) if H > IN else None
    acts = []
    for idx, gate in enumerate(["forget", "input", "gate", "output"]):
        W = (params["Ws"][idx] if wRank is None
             else jnp.dot(params["W"], params["Ws"][idx], precision=hp))
        U = (params["Us"][idx] if uRanks is None
             else jnp.dot(params["U"], params["Us"][idx], precision=hp))
        input_dia = jnp.diagonal(W) * x
        if pad is not None:
            input_dia = jnp.concatenate([input_dia, pad], axis=1)
        pre = (input_dia + jnp.dot(x, W, precision=hp)
               + jnp.diagonal(U) * h + jnp.dot(h, U, precision=hp)
               + params["biases"][idx])
        acts.append(jnp.tanh(pre) if gate == "gate" else jax.nn.sigmoid(pre))
    c_next = acts[0] * c + acts[1] * acts[2]
    h_next = acts[3] * jnp.tanh(c_next)
    return h_next, c_next


if __name__ == "__main__":
    # small, lane-friendly shapes: hidden multiple of 128, batch multiple of 16
    B, IN, H = 32, 128, 256
    WRANK, URANKS = 16, 24
    # (ctor flags isMask/isBand/g/isShuffle/isdiagonal/initdiagonal/zerodiagonal
    #  are unused in the module's forward and therefore not modeled)

    key = jax.random.PRNGKey(0)
    ks = jax.random.split(key, 16)
    params = {
        "W": 0.1 * jax.random.normal(ks[0], (IN, WRANK), _F32),
        "U": 0.1 * jax.random.normal(ks[1], (H, URANKS), _F32),
        "Ws": [0.1 * jax.random.normal(ks[2 + t], (WRANK, H), _F32)
               for t in range(4)],
        "Us": [0.1 * jax.random.normal(ks[6 + t], (URANKS, H), _F32)
               for t in range(4)],
        "biases": [jnp.ones((1, H), _F32) for _ in range(4)],
    }
    x = jax.random.normal(ks[10], (B, IN), _F32)
    h0 = jax.random.normal(ks[11], (B, H), _F32)
    c0 = jax.random.normal(ks[12], (B, H), _F32)

    h_ref, c_ref = ref_forward(x, h0, c0, params, wRank=WRANK, uRanks=URANKS)

    # Packing is hoisted out of the per-step call -- do it once per weight
    # update and reuse across timesteps.
    common = dict(input_size=IN, hidden_size=H, wRank=WRANK, uRanks=URANKS)
    packed_f32 = pack_params(params, matmul_dtype=jnp.float32, **common)
    packed_bf16 = pack_params(params, matmul_dtype=jnp.bfloat16, **common)
    packed_lr32 = pack_params(params, matmul_dtype=jnp.float32,
                              low_rank=True, **common)

    run = jax.jit(dual_diagonal_lstm_cell)

    # fused f32 path: tight semantics check
    h1, c1 = run(x, h0, c0, packed_f32)
    jax.block_until_ready((h1, c1))
    assert jnp.allclose(h1, h_ref, atol=1e-4, rtol=1e-4), "h_next mismatch (fused f32)"
    assert jnp.allclose(c1, c_ref, atol=1e-4, rtol=1e-4), "c_next mismatch (fused f32)"

    # fused bf16 MXU-operand path (works on v5e/v6e/v7x): loose tolerance
    h2, c2 = run(x, h0, c0, packed_bf16)
    jax.block_until_ready((h2, c2))
    assert jnp.allclose(h2, h_ref, atol=5e-2, rtol=5e-2), "h_next mismatch (fused bf16)"
    assert jnp.allclose(c2, c_ref, atol=5e-2, rtol=5e-2), "c_next mismatch (fused bf16)"

    # low-rank two-stage path (for very large H), f32: tight check
    h3, c3 = run(x, h0, c0, packed_lr32)
    jax.block_until_ready((h3, c3))
    assert jnp.allclose(h3, h_ref, atol=1e-4, rtol=1e-4), "h_next mismatch (lowrank f32)"
    assert jnp.allclose(c3, c_ref, atol=1e-4, rtol=1e-4), "c_next mismatch (lowrank f32)"

    print("KERNEL_OK")
</pallas_src>

<mosaic_0001>
module attributes {stable_mosaic.version = 11 : i64} {
  func.func @kernel(%arg0: i32, %arg1: memref<16x128xf32, #tpu.memory_space<vmem>>, %arg2: memref<16x256xf32, #tpu.memory_space<vmem>>, %arg3: memref<16x256xf32, #tpu.memory_space<vmem>>, %arg4: memref<128x1024xf32, #tpu.memory_space<vmem>>, %arg5: memref<256x1024xf32, #tpu.memory_space<vmem>>, %arg6: memref<1x1024xf32, #tpu.memory_space<vmem>>, %arg7: memref<16x256xf32, #tpu.memory_space<vmem>>, %arg8: memref<16x256xf32, #tpu.memory_space<vmem>>) attributes {dimension_semantics = [#tpu.dimension_semantics<parallel>], iteration_bounds = array<i64: 2>, scalar_prefetch = 0 : i64, scratch_operands = 0 : i64, tpu.core_type = #tpu.core_type<tc>, window_params = [{transform_indices = @transform_0, window_bounds = array<i64: 16, 128>}, {transform_indices = @transform_1, window_bounds = array<i64: 16, 256>}, {transform_indices = @transform_2, window_bounds = array<i64: 16, 256>}, {pipeline_mode = #tpu.pipeline_mode<synchronous>, transform_indices = @transform_3, window_bounds = array<i64: 128, 1024>}, {pipeline_mode = #tpu.pipeline_mode<synchronous>, transform_indices = @transform_4, window_bounds = array<i64: 256, 1024>}, {pipeline_mode = #tpu.pipeline_mode<synchronous>, transform_indices = @transform_5, window_bounds = array<i64: 1, 1024>}, {transform_indices = @transform_6, window_bounds = array<i64: 16, 256>}, {transform_indices = @transform_7, window_bounds = array<i64: 16, 256>}]} {
    %c0 = arith.constant 0 : index
    %c0_0 = arith.constant 0 : index
    %0 = vector.load %arg1[%c0, %c0_0] : memref<16x128xf32, #tpu.memory_space<vmem>>, vector<16x128xf32>
    %c0_1 = arith.constant 0 : index
    %c0_2 = arith.constant 0 : index
    %1 = vector.load %arg4[%c0_1, %c0_2] : memref<128x1024xf32, #tpu.memory_space<vmem>>, vector<128x1024xf32>
    %cst = arith.constant dense<0.000000e+00> : vector<16x1024xf32>
    %2 = tpu.matmul %0, %1, %cst {dimension_numbers = #tpu.dot_dimension_numbers<[1], [0], [0], [1], [0, 0, 1, 1], [], []>} : vector<16x128xf32>, vector<128x1024xf32>, vector<16x1024xf32> -> vector<16x1024xf32>
    %c0_3 = arith.constant 0 : index
    %c0_4 = arith.constant 0 : index
    %3 = vector.load %arg2[%c0_3, %c0_4] : memref<16x256xf32, #tpu.memory_space<vmem>>, vector<16x256xf32>
    %c0_5 = arith.constant 0 : index
    %c0_6 = arith.constant 0 : index
    %4 = vector.load %arg5[%c0_5, %c0_6] : memref<256x1024xf32, #tpu.memory_space<vmem>>, vector<256x1024xf32>
    %cst_7 = arith.constant dense<0.000000e+00> : vector<16x1024xf32>
    %5 = tpu.matmul %3, %4, %cst_7 {dimension_numbers = #tpu.dot_dimension_numbers<[1], [0], [0], [1], [0, 0, 1, 1], [], []>} : vector<16x256xf32>, vector<256x1024xf32>, vector<16x1024xf32> -> vector<16x1024xf32>
    %6 = arith.addf %2, %5 : vector<16x1024xf32>
    %c0_8 = arith.constant 0 : index
    %c0_9 = arith.constant 0 : index
    %7 = vector.load %arg6[%c0_8, %c0_9] : memref<1x1024xf32, #tpu.memory_space<vmem>>, vector<1x1024xf32>
    %8 = vector.broadcast %7 : vector<1x1024xf32> to vector<16x1024xf32>
    %9 = arith.addf %6, %8 : vector<16x1024xf32>
    %10 = vector.extract_strided_slice %9 {offsets = [0, 0], sizes = [16, 256], strides = [1, 1]} : vector<16x1024xf32> to vector<16x256xf32>
    %cst_10 = arith.constant 5.000000e-01 : f32
    %11 = vector.broadcast %cst_10 : f32 to vector<16x256xf32>
    %12 = arith.mulf %11, %10 : vector<16x256xf32>
    %13 = math.tanh %12 : vector<16x256xf32>
    %cst_11 = arith.constant 5.000000e-01 : f32
    %14 = vector.broadcast %cst_11 : f32 to vector<16x256xf32>
    %15 = arith.mulf %14, %13 : vector<16x256xf32>
    %cst_12 = arith.constant 5.000000e-01 : f32
    %16 = vector.broadcast %cst_12 : f32 to vector<16x256xf32>
    %17 = arith.addf %15, %16 : vector<16x256xf32>
    %18 = vector.extract_strided_slice %9 {offsets = [0, 256], sizes = [16, 256], strides = [1, 1]} : vector<16x1024xf32> to vector<16x256xf32>
    %cst_13 = arith.constant 5.000000e-01 : f32
    %19 = vector.broadcast %cst_13 : f32 to vector<16x256xf32>
    %20 = arith.mulf %19, %18 : vector<16x256xf32>
    %21 = math.tanh %20 : vector<16x256xf32>
    %cst_14 = arith.constant 5.000000e-01 : f32
    %22 = vector.broadcast %cst_14 : f32 to vector<16x256xf32>
    %23 = arith.mulf %22, %21 : vector<16x256xf32>
    %cst_15 = arith.constant 5.000000e-01 : f32
    %24 = vector.broadcast %cst_15 : f32 to vector<16x256xf32>
    %25 = arith.addf %23, %24 : vector<16x256xf32>
    %26 = vector.extract_strided_slice %9 {offsets = [0, 512], sizes = [16, 256], strides = [1, 1]} : vector<16x1024xf32> to vector<16x256xf32>
    %27 = math.tanh %26 : vector<16x256xf32>
    %28 = vector.extract_strided_slice %9 {offsets = [0, 768], sizes = [16, 256], strides = [1, 1]} : vector<16x1024xf32> to vector<16x256xf32>
    %cst_16 = arith.constant 5.000000e-01 : f32
    %29 = vector.broadcast %cst_16 : f32 to vector<16x256xf32>
    %30 = arith.mulf %29, %28 : vector<16x256xf32>
    %31 = math.tanh %30 : vector<16x256xf32>
    %cst_17 = arith.constant 5.000000e-01 : f32
    %32 = vector.broadcast %cst_17 : f32 to vector<16x256xf32>
    %33 = arith.mulf %32, %31 : vector<16x256xf32>
    %cst_18 = arith.constant 5.000000e-01 : f32
    %34 = vector.broadcast %cst_18 : f32 to vector<16x256xf32>
    %35 = arith.addf %33, %34 : vector<16x256xf32>
    %c0_19 = arith.constant 0 : index
    %c0_20 = arith.constant 0 : index
    %36 = vector.load %arg3[%c0_19, %c0_20] : memref<16x256xf32, #tpu.memory_space<vmem>>, vector<16x256xf32>
    %37 = arith.mulf %17, %36 : vector<16x256xf32>
    %38 = arith.mulf %25, %27 : vector<16x256xf32>
    %39 = arith.addf %37, %38 : vector<16x256xf32>
    %40 = math.tanh %39 : vector<16x256xf32>
    %41 = arith.mulf %35, %40 : vector<16x256xf32>
    %c0_21 = arith.constant 0 : index
    %c0_22 = arith.constant 0 : index
    %42 = vector.load %arg7[%c0_21, %c0_22] : memref<16x256xf32, #tpu.memory_space<vmem>>, vector<16x256xf32>
    tpu.vector_store %arg7[%c0_21, %c0_22], %41 {strides = array<i32>} : memref<16x256xf32, #tpu.memory_space<vmem>>, vector<16x256xf32>,
    %c0_23 = arith.constant 0 : index
    %c0_24 = arith.constant 0 : index
    %43 = vector.load %arg8[%c0_23, %c0_24] : memref<16x256xf32, #tpu.memory_space<vmem>>, vector<16x256xf32>
    tpu.vector_store %arg8[%c0_23, %c0_24], %39 {strides = array<i32>} : memref<16x256xf32, #tpu.memory_space<vmem>>, vector<16x256xf32>,
    return
  }
  func.func @transform_0(%arg0: i32) -> (i32, i32) {
    %c0_i32 = arith.constant 0 : i32
    %c0_i32_0 = arith.constant 0 : i32
    return %arg0, %c0_i32 : i32, i32
  }
  func.func @transform_1(%arg0: i32) -> (i32, i32) {
    %c0_i32 = arith.constant 0 : i32
    %c0_i32_0 = arith.constant 0 : i32
    return %arg0, %c0_i32 : i32, i32
  }
  func.func @transform_2(%arg0: i32) -> (i32, i32) {
    %c0_i32 = arith.constant 0 : i32
    %c0_i32_0 = arith.constant 0 : i32
    return %arg0, %c0_i32 : i32, i32
  }
  func.func @transform_3(%arg0: i32) -> (i32, i32) {
    %c0_i32 = arith.constant 0 : i32
    %c0_i32_0 = arith.constant 0 : i32
    %c0_i32_1 = arith.constant 0 : i32
    return %c0_i32, %c0_i32_0 : i32, i32
  }
  func.func @transform_4(%arg0: i32) -> (i32, i32) {
    %c0_i32 = arith.constant 0 : i32
    %c0_i32_0 = arith.constant 0 : i32
    %c0_i32_1 = arith.constant 0 : i32
    return %c0_i32, %c0_i32_0 : i32, i32
  }
  func.func @transform_5(%arg0: i32) -> (i32, i32) {
    %c0_i32 = arith.constant 0 : i32
    %c0_i32_0 = arith.constant 0 : i32
    %c0_i32_1 = arith.constant 0 : i32
    return %c0_i32, %c0_i32_0 : i32, i32
  }
  func.func @transform_6(%arg0: i32) -> (i32, i32) {
    %c0_i32 = arith.constant 0 : i32
    %c0_i32_0 = arith.constant 0 : i32
    return %arg0, %c0_i32 : i32, i32
  }
  func.func @transform_7(%arg0: i32) -> (i32, i32) {
    %c0_i32 = arith.constant 0 : i32
    %c0_i32_0 = arith.constant 0 : i32
    return %arg0, %c0_i32 : i32, i32
  }
}

</mosaic_0001>

<bundles_post_ra>
// kernel: dual_diagonal_lstm_cell.1
= control target key start
LH: loop header
LB: loop body
LE: loop exit
PB: predicated region body
PF: predicated region fallthrough
CT: control target
= control target key end

     0   :  { %s2664_s0 = inlined_call_operand.hbm [shape: f32[32,128], index: 0, kind: input, shape index: {}]   ;;  %s2665_s1 = inlined_call_operand.hbm [shape: f32[32,256], index: 1, kind: input, shape index: {}]   ;;  %s2666_s2 = inlined_call_operand.hbm [shape: f32[32,256], index: 2, kind: input, shape index: {}]   ;;  %s2667_s3 = inlined_call_operand.hbm [shape: f32[128,1024], index: 3, kind: input, shape index: {}]   ;;  %s2668_s4 = inlined_call_operand.hbm [shape: f32[256,1024], index: 4, kind: input, shape index: {}]   ;;  %s2669_s5 = inlined_call_operand.hbm [shape: f32[1,1024], index: 5, kind: input, shape index: {}]   ;;  %s2670_s6 = inlined_call_operand.hbm [shape: f32[32,256], index: 6, kind: output, shape index: {0}]   ;;  %s2671_s7 = inlined_call_operand.hbm [shape: f32[32,256], index: 7, kind: output, shape index: {1}]  }
   0x1   :  { %2686 = sst [smem:[#allocation28_spill]] %s2665_s1 }
   0x2   :  { %2687 = sst [smem:[#allocation29_spill]] %s2667_s3 }
   0x3   :  { %2688 = sst [smem:[#allocation30_spill]] %s2668_s4 }
   0x4   :  { %2689 = sst [smem:[#allocation31_spill]] %s2669_s5 }
   0x5   :  { %2690 = sst [smem:[#allocation32_spill]] %s2670_s6 }
   0x6   :  { %13 = vsyncpa [#allocation3], 0 }
   0x7   :  { %15 = vsyncpa [#allocation3 + $0x1], 0 }
   0x8   :  { %16 = vsyncpa [#allocation6], 0 }
   0x9   :  { %18 = vsyncpa [#allocation6 + $0x1], 0 }
   0xa   :  { %19 = vsyncpa [#allocation9], 0 }
   0xb   :  { %20 = vsyncpa [#allocation12], 0 }
   0xc   :  { %21 = vsyncpa [#allocation4], 0 }
   0xd   :  { %23 = vsyncpa [#allocation4 + $0x1], 0 }
   0xe   :  { %24 = vsyncpa [#allocation15], 0 }
   0xf   :  { %26 = vsyncpa [#allocation15 + $0x1], 0  ;;  %s2252_s24 = smov 0   ;;  %s2254_s25 = smov 0  }
  0x10   :  { %s2256_s26 = smov 0   ;;  %s2258_s27 = smov 0  }
  0x11 LB: > { %2691 = sst [smem:[#allocation22_spill]] %s2187_s24  ;;  %s2273_s28 = sadd.s32 4294967295, %s2199_s27   ;;  %s2199_s27 = sphi %s2258_s27, %s2721_s27   ;;  %s2195_s26 = sphi %s2256_s26, %s2726_s26   ;;  %s2191_s25 = sphi %s2254_s25, %s2725_s25   ;;  %s2187_s24 = sphi %s2252_s24, %s2724_s24  }
  0x12   : > { %2692 = sst [smem:[#allocation23_spill]] %s2195_s26  ;;  %s1724_s29 = sadd.s32 4294967294, %s2199_s27  }
  0x13   : > { %p52_p0 = scmp.ne.s32.totalorder %s2191_s25, %s2187_s24  ;;  %p2676_p1 = scmp.eq.s32.totalorder %s2273_s28, 0 }
  0x14   : > { %p191_p2 = scmp.eq.s32.totalorder %s2273_s28, 1  ;;  %p197_p3 = scmp.eq.s32.totalorder %s1724_s29, 1 }
  0x15   : > { %p2282_p4 = por %p2676_p1, %p52_p0  ;;  %p1725_p5 = scmp.ge.s32.totalorder %s2199_s27, 1 }
  0x16   : > { %p2287_p6 = por %p197_p3, %p52_p0  ;;  %p230_p7 = scmp.lt.s32.totalorder %s2199_s27, 3 }
  0x17   : > { %s2696_s3 = sld [smem:[#allocation29_spill]]  ;;  %s2201_s13 = smov [#allocation8]  }
  0x18   : > { %s2694_s8 = scalar_select %p2287_p6, 1, 0 }
  0x19   : > { %p2295_p8 = pnand %p1725_p5, %p230_p7  ;;  %s243_s14 = sshll.u32 %s2201_s13, 4  ;;  %s244_s14 = int_to_ptr.vmem [resolvable:$true] %s243_s14 }
  0x1a   : > { %2695 = sst [smem:[#allocation24_spill]] %s2694_s8  ;;  %s2309_s16 = sadd.s32 1, %s2199_s27  }
  0x1b   : > { %p1791_p9 = pneg %p2295_p8  ;;  %2699 = sst [smem:[#allocation25_spill]] %s2309_s16 }
  0x1c   : > { %s2672_s17 = smov 1024   ;;  %s2673_s18 = smov 64  }
  0x1d   : > { %s241_s11 = sshll.u32 %s2696_s3, 4  ;;  %p2303_p10 = pnand %p1791_p9, %p2676_p1  ;;  %s242_s11 = int_to_ptr.hbm [resolvable:$true] %s241_s11 }
  0x1e   : > { %s36_s19 = ssub.s32 %s2199_s27, %s2309_s16  ;;  %s39_s20 = sadd.s32 1, %s2195_s26 }
  0x1f   : > { %1794 = dma.hbm_to_vmem [thread:$0]  (!%p2303_p10), %s242_s11, 16384, %s244_s14, [#allocation9], %s2672_s17, %s2672_s17, %s2673_s18  }
  0x20   : > { %p37_p12 = scmp.eq.s32.totalorder %s36_s19, 0  ;;  %p46_p13 = scmp.ne.s32.totalorder %s2195_s26, %s2191_s25 }
  0x21   : > { %p47_p0 = scmp.eq.s32.totalorder %s2199_s27, 0  ;;  %p1821_p3 = scmp.lt.s32.totalorder %s2199_s27, 2 }
  0x22   : > { %s2324_s21 = scalar_select %p37_p12, %s2195_s26, %s39_s20  }
  0x23   : > { %p48_p5 = por %p47_p0, %p46_p13  ;;  %p2328_p7 = por %p191_p2, %p46_p13 }
  0x24   : > { %2700 = sst [smem:[#allocation26_spill]] %s2324_s21  ;;  %s2333_s23 = sand.u32 1, %s2195_s26  }
  0x25   : > { %s2701_s22 = scalar_select %p2328_p7, 1, 0 }
  0x26   : > { %s305_s29 = sand.u32 1, %s2199_s27   ;;  %p2336_p9 = pnand %p1821_p3, %p48_p5 }
  0x27   : > { %2702 = sst [smem:[#allocation27_spill]] %s2701_s22  ;;  %s2675_s10 = sshll.u32 %s2333_s23, 5 }
  0x28   : > { %s1762_s11 = sshll.u32 %s2199_s27, 5  ;;  %s2704_s1 = sld [smem:[#allocation28_spill]] }
  0x29   : > { %s309_s20 = scalar_lea.vmem [#allocation5], %s2675_s10  ;;  %s2347_s3 = scalar_lea.sflag [#allocation6], %s305_s29 }
  0x2a   : > { %s318_s17 = sshll.u32 %s309_s20, 4  ;;  %p1943_p12 = pneg %p2336_p9  ;;  %s319_s17 = int_to_ptr.vmem [resolvable:$true] %s318_s17 }
  0x2e   : > { %s315_s19 = scalar_lea.hbm %s2704_s1, %s1762_s11  ;;  %s1946_s10 = scalar_lea.hbm %s2704_s1, 64 }
  0x2f   : > { %s316_s18 = sshll.u32 %s315_s19, 4  ;;  %s317_s18 = int_to_ptr.hbm [resolvable:$true] %s316_s18 }
  0x30   : > { %s1939_s21 = sshra.s32 %s317_s18, 4  ;;  %s1940_s21 = int_to_ptr.hbm [resolvable:$true] %s1939_s21 }
  0x31   : > { %s1941_s26 = scalar_lea.hbm %s1940_s21, 32  ;;  %p1947_p3 = scmp.lt.s32.totalorder %s1940_s21, %s2704_s1 }
  0x32   : > { %p1942_p2 = scmp.ne.s32.totalorder %s1940_s21, %s1941_s26  ;;  %p1948_p5 = scmp.lt.s32.totalorder %s1946_s10, %s1941_s26 }
  0x34   : > { %p1944_p13 = pnand %p1943_p12, %p1942_p2  ;;  %p1949_p11 = por %p1948_p5, %p1947_p3 }
  0x36   : > { %p1945_p0 = pneg %p1944_p13 }
  0x38   : > { %p1950_p1 = pnand %p1949_p11, %p1945_p0 }
  0x3a   : > { %1953 = shalt.err (!%p1950_p1)
}
  0x3b   : > { %s2681_s29 = smov 256   ;;  %s2682_s16 = smov 16  }
  0x3c   : > { %1807 = dma.hbm_to_vmem [thread:$0]  (!%p2336_p9), %s317_s18, 512, %s319_s17, %s2347_s3, %s2681_s29, %s2681_s29, %s2682_s16  }
  0x3d   : > { %s338_s20 = scalar_lea.hbm %s2666_s2, %s1762_s11  ;;  %s2705_s21 = sshll.u32 %s2333_s23, 5 }
  0x3e   : > { %s332_s26 = scalar_lea.vmem [#allocation7], %s2705_s21  ;;  %s339_s19 = sshll.u32 %s338_s20, 4  ;;  %s2373_s19 = int_to_ptr.hbm [resolvable:$true] %s339_s19 }
  0x3f   : > { %s341_s10 = sshll.u32 %s332_s26, 4  ;;  %s2706_s4 = sld [smem:[#allocation30_spill]]  ;;  %s2371_s10 = int_to_ptr.vmem [resolvable:$true] %s341_s10 }
  0x40   : > { %s2206_s17 = smov [#allocation10]   ;;  %s2707_s5 = sld [smem:[#allocation31_spill]] }
  0x41   : > { %s257_s18 = sshll.u32 %s2206_s17, 4  ;;  %s2708_s20 = smov 64   ;;  %s258_s18 = int_to_ptr.vmem [resolvable:$true] %s257_s18 }
  0x42   : > { %s2709_s21 = smov 1024   ;;  %s2207_s26 = smov [#allocation11]  }
  0x43   : > { %s272_s29 = sshll.u32 %s2207_s26, 4  ;;  %s1730_s1 = sshll.u32 %s2333_s23, 4  ;;  %s273_s29 = int_to_ptr.vmem [resolvable:$true] %s272_s29 }
  0x44   : > { %s1760_s8 = sshll.u32 %s2199_s27, 4  ;;  %s287_s17 = scalar_lea.vmem [#allocation2], %s1730_s1 }
  0x45   : > { %s255_s24 = sshll.u32 %s2706_s4, 4  ;;  %s295_s16 = sshll.u32 %s287_s17, 4  ;;  %s256_s24 = int_to_ptr.hbm [resolvable:$true] %s255_s24  ;;  %s296_s16 = int_to_ptr.vmem [resolvable:$true] %s295_s16 }
  0x46   : > { %s270_s14 = sshll.u32 %s2707_s5, 4  ;;  %s292_s4 = scalar_lea.hbm %s2664_s0, %s1760_s8  ;;  %s271_s14 = int_to_ptr.hbm [resolvable:$true] %s270_s14 }
  0x47   : > { %1797 = dma.hbm_to_vmem [thread:$0]  (!%p2303_p10), %s256_s24, 32768, %s258_s18, [#allocation9], %s2709_s21, %s2709_s21, %s2708_s20  }
  0x48   : > { %1800 = dma.hbm_to_vmem [thread:$0]  (!%p2303_p10), %s271_s14, 128, %s273_s29, [#allocation12]  }
  0x49   : > { %s293_s5 = sshll.u32 %s292_s4, 4  ;;  %s284_s6 = scalar_lea.sflag [#allocation3], %s2333_s23  ;;  %s294_s5 = int_to_ptr.hbm [resolvable:$true] %s293_s5 }
  0x4a   : > { %s2029_s22 = sshra.s32 %s294_s5, 4  ;;  %s2036_s18 = scalar_lea.hbm %s2664_s0, 32  ;;  %s2030_s22 = int_to_ptr.hbm [resolvable:$true] %s2029_s22 }
  0x4b   : > { %s2031_s24 = scalar_lea.hbm %s2030_s22, 16  ;;  %p2037_p10 = scmp.lt.s32.totalorder %s2030_s22, %s2664_s0 }
  0x4c   : > { %p2032_p1 = scmp.ne.s32.totalorder %s2030_s22, %s2031_s24  ;;  %p2038_p13 = scmp.lt.s32.totalorder %s2036_s18, %s2031_s24 }
  0x4e   : > { %p2034_p11 = pnand %p2032_p1, %p1943_p12  ;;  %p2039_p0 = por %p2038_p13, %p2037_p10 }
  0x50   : > { %p2035_p2 = pneg %p2034_p11 }
  0x52   : > { %p2040_p3 = pnand %p2039_p0, %p2035_p2 }
  0x54   : > { %2043 = shalt.err (!%p2040_p3)
}
  0x55   : > { %s2208_s4 = smov 128   ;;  %s2209_s23 = smov 8  }
  0x56   : > { %1804 = dma.hbm_to_vmem [thread:$0]  (!%p2336_p9), %s294_s5, 256, %s296_s16, %s284_s6, %s2208_s4, %s2208_s4, %s2209_s23  }
  0x57   : > { %s2059_s21 = sshra.s32 %s2373_s19, 4  ;;  %s2066_s8 = scalar_lea.hbm %s2666_s2, 64  ;;  %s2060_s21 = int_to_ptr.hbm [resolvable:$true] %s2059_s21 }
  0x58   : > { %s2061_s26 = scalar_lea.hbm %s2060_s21, 32  ;;  %p2067_p2 = scmp.lt.s32.totalorder %s2060_s21, %s2666_s2 }
  0x59   : > { %p2062_p5 = scmp.ne.s32.totalorder %s2060_s21, %s2061_s26  ;;  %p2068_p10 = scmp.lt.s32.totalorder %s2066_s8, %s2061_s26 }
  0x5b   : > { %p2064_p1 = pnand %p2062_p5, %p1943_p12  ;;  %p2069_p13 = por %p2068_p10, %p2067_p2 }
  0x5d   : > { %p2065_p11 = pneg %p2064_p1 }
  0x5f   : > { %p2070_p0 = pnand %p2069_p13, %p2065_p11 }
  0x61   : > { %2073 = shalt.err (!%p2070_p0)
}
  0x62   : > { %s2710_s5 = smov 16   ;;  %s2711_s6 = smov 256  }
  0x63   : > { %1810 = dma.hbm_to_vmem [thread:$0]  (!%p2336_p9), %s2373_s19, 512, %s2371_s10, %s2347_s3, %s2711_s6, %s2711_s6, %s2710_s5  }
  0x64   : > { %353 = sbr.rel (%p2295_p8) target bundleno = 500 (0x1f4), region = 44  ;;  %s2426_s16 = sand.u32 (!%p2295_p8), 1, %s2191_s25  }
  0x65   : > { %s1742_s11 = sshll.u32 (!%p2295_p8), %s2426_s16, 4  ;;  %s356_s24 = scalar_lea.sflag (!%p2295_p8), [#allocation3], %s2426_s16 }
  0x66   : > { %s2430_s15 = scalar_lea.vmem (!%p2295_p8), [#allocation2], %s1742_s11 }
  0x69   : > { %2162 = dma.done.wait (%p2282_p4), %s356_s24, 256  }
  0x6a   : > { %2164 = vsyncadd (%p2282_p4), %s356_s24, 4294967040  ;;  %s365_s3 = sand.u32 1, %s2273_s28   ;;  %s2438_s12 = sshll.u32 %s2426_s16, 5 }
  0x6b   : > { %s366_s9 = scalar_lea.sflag [#allocation6], %s365_s3  ;;  %s2441_s10 = scalar_lea.vmem [#allocation5], %s2438_s12 }
  0x6c   : > { %2166 = dma.done.wait (%p2282_p4), %s366_s9, 1024  }
  0x6d   : > { %2168 = vsyncadd (%p2282_p4), %s366_s9, 4294966272  ;;  %s2448_s19 = scalar_lea.vmem [#allocation7], %s2438_s12  ;;  %p2712_p8 = scmp.eq.s32.totalorder %s2273_s28, 0 }
  0x6f   : > { %2170 = dma.done.wait (%p2712_p8), [#allocation9], 49152   ;;  %p2713_p9 = pmov %p2712_p8 }
  0x70   : > { %p2714_p12 = pmov %p2712_p8 }
  0x71   : > { %2172 = vsyncadd (%p2713_p9), [#allocation9], 4294918144 }
  0x72   : > { %2174 = dma.done.wait (%p2714_p12), [#allocation12], 128   ;;  %p2715_p3 = pmov %p2712_p8 }
  0x73   : > { %v700_v0 = vld [vmem:[#allocation10 + $0x3c0] sm:$0xff]  ;;  %v701_v2 = vld [vmem:[#allocation10 + $0x3c8] sm:$0xff]  ;;  %s2583_s30 = scalar_lea.vmem [#allocation14], %s2438_s12  ;;  %s1766_s29 = sshll.u32 %s2273_s28, 5 }
  0x74   : > { %2176 = vsyncadd (%p2715_p3), [#allocation12], 4294967168  ;;  %v828_v1 = vld [vmem:[#allocation10 + $0x7c0] sm:$0xff]  ;;  %836 = vmatpush.msra.mxu0 %v700_v0  ;;  %v829_v3 = vld [vmem:[#allocation10 + $0x7c8] sm:$0xff]  ;;  %882 = vmatpush.msra.mxu2 %v701_v2  ;;  %s1542_s20 = scalar_lea.hbm %s2671_s7, %s1766_s29  ;;  %s1543_s4 = sshll.u32 %s2583_s30, 4  ;;  %s2601_s4 = int_to_ptr.vmem [resolvable:$true] %s1543_s4 }
  0x75   : > { %859 = vmatpush.msra.mxu1 %v828_v1  ;;  %v692_v4 = vld [vmem:[#allocation10 + $0x380] sm:$0xff]  ;;  %905 = vmatpush.msra.mxu3 %v829_v3  ;;  %v693_v6 = vld [vmem:[#allocation10 + $0x388] sm:$0xff]  ;;  %v702_v0 = vld [vmem:[#allocation10 + $0x3d0] sm:$0xff]  ;;  %s1545_s23 = sshll.u32 %s1542_s20, 4  ;;  %s2598_s21 = scalar_lea.vmem [#allocation13], %s2438_s12  ;;  %s2603_s23 = int_to_ptr.hbm [resolvable:$true] %s1545_s23 }
  0x76   : > { %v820_v5 = vld [vmem:[#allocation10 + $0x780] sm:$0xff]  ;;  %v821_v7 = vld [vmem:[#allocation10 + $0x788] sm:$0xff]  ;;  %837 = vmatpush.msra.mxu0 %v692_v4  ;;  %883 = vmatpush.msra.mxu2 %v693_v6  ;;  %v830_v1 = vld [vmem:[#allocation10 + $0x7d0] sm:$0xff]  ;;  %s2717_s8 = sld [smem:[#allocation32_spill]]  ;;  %s1512_s13 = scalar_lea.sflag [#allocation15], %s2426_s16 }
  0x77   : > { %v684_v8 = vld [vmem:[#allocation10 + $0x340] sm:$0xff]  ;;  %860 = vmatpush.msra.mxu1 %v820_v5  ;;  %v685_v10 = vld [vmem:[#allocation10 + $0x348] sm:$0xff]  ;;  %906 = vmatpush.msra.mxu3 %v821_v7  ;;  %v703_v2 = vld [vmem:[#allocation10 + $0x3d8] sm:$0xff]  ;;  %s2103_s5 = sshra.s32 %s2603_s23, 4  ;;  %s2104_s5 = int_to_ptr.hbm [resolvable:$true] %s2103_s5 }
  0x78   : > { %v812_v9 = vld [vmem:[#allocation10 + $0x740] sm:$0xff]  ;;  %v813_v11 = vld [vmem:[#allocation10 + $0x748] sm:$0xff]  ;;  %838 = vmatpush.msra.mxu0 %v684_v8  ;;  %884 = vmatpush.msra.mxu2 %v685_v10  ;;  %v831_v3 = vld [vmem:[#allocation10 + $0x7d8] sm:$0xff]  ;;  %s2105_s6 = scalar_lea.hbm %s2104_s5, 32  ;;  %p2110_p11 = scmp.lt.s32.totalorder %s2104_s5, %s2671_s7 }
  0x79   : > { %v676_v12 = vld [vmem:[#allocation10 + $0x300] sm:$0xff]  ;;  %861 = vmatpush.msra.mxu1 %v812_v9  ;;  %v677_v14 = vld [vmem:[#allocation10 + $0x308] sm:$0xff]  ;;  %907 = vmatpush.msra.mxu3 %v813_v11  ;;  %v694_v4 = vld [vmem:[#allocation10 + $0x390] sm:$0xff]  ;;  %p2106_p4 = scmp.ne.s32.totalorder %s2104_s5, %s2105_s6 }
  0x7a   : > { %v804_v13 = vld [vmem:[#allocation10 + $0x700] sm:$0xff]  ;;  %v805_v15 = vld [vmem:[#allocation10 + $0x708] sm:$0xff]  ;;  %839 = vmatpush.msra.mxu0 %v676_v12  ;;  %885 = vmatpush.msra.mxu2 %v677_v14  ;;  %v822_v5 = vld [vmem:[#allocation10 + $0x790] sm:$0xff] }
  0x7b   : > { %v668_v16 = vld [vmem:[#allocation10 + $0x2c0] sm:$0xff]  ;;  %862 = vmatpush.msra.mxu1 %v804_v13  ;;  %v669_v18 = vld [vmem:[#allocation10 + $0x2c8] sm:$0xff]  ;;  %908 = vmatpush.msra.mxu3 %v805_v15  ;;  %v695_v6 = vld [vmem:[#allocation10 + $0x398] sm:$0xff]  ;;  %p2107_p5 = pnand %p2106_p4, %p2328_p7 }
  0x7c   : > { %v796_v17 = vld [vmem:[#allocation10 + $0x6c0] sm:$0xff]  ;;  %v797_v19 = vld [vmem:[#allocation10 + $0x6c8] sm:$0xff]  ;;  %840 = vmatpush.msra.mxu0 %v668_v16  ;;  %886 = vmatpush.msra.mxu2 %v669_v18  ;;  %v823_v7 = vld [vmem:[#allocation10 + $0x798] sm:$0xff]  ;;  %s1524_s17 = scalar_lea.hbm %s2717_s8, %s1766_s29 }
  0x7d   : > { %v660_v20 = vld [vmem:[#allocation10 + $0x280] sm:$0xff]  ;;  %863 = vmatpush.msra.mxu1 %v796_v17  ;;  %v661_v22 = vld [vmem:[#allocation10 + $0x288] sm:$0xff]  ;;  %909 = vmatpush.msra.mxu3 %v797_v19  ;;  %v686_v8 = vld [vmem:[#allocation10 + $0x350] sm:$0xff]  ;;  %p2108_p1 = pneg %p2107_p5 }
  0x7e   : > { %v788_v21 = vld [vmem:[#allocation10 + $0x680] sm:$0xff]  ;;  %v789_v23 = vld [vmem:[#allocation10 + $0x688] sm:$0xff]  ;;  %841 = vmatpush.msra.mxu0 %v660_v20  ;;  %887 = vmatpush.msra.mxu2 %v661_v22  ;;  %v814_v9 = vld [vmem:[#allocation10 + $0x750] sm:$0xff] }
  0x7f   : > { %v652_v24 = vld [vmem:[#allocation10 + $0x240] sm:$0xff]  ;;  %864 = vmatpush.msra.mxu1 %v788_v21  ;;  %v653_v26 = vld [vmem:[#allocation10 + $0x248] sm:$0xff]  ;;  %910 = vmatpush.msra.mxu3 %v789_v23  ;;  %v687_v10 = vld [vmem:[#allocation10 + $0x358] sm:$0xff] }
  0x80   : > { %v780_v25 = vld [vmem:[#allocation10 + $0x640] sm:$0xff]  ;;  %v781_v27 = vld [vmem:[#allocation10 + $0x648] sm:$0xff]  ;;  %842 = vmatpush.msra.mxu0 %v652_v24  ;;  %888 = vmatpush.msra.mxu2 %v653_v26  ;;  %v815_v11 = vld [vmem:[#allocation10 + $0x758] sm:$0xff] }
  0x81   : > { %v644_v28 = vld [vmem:[#allocation10 + $0x200] sm:$0xff]  ;;  %865 = vmatpush.msra.mxu1 %v780_v25  ;;  %v645_v30 = vld [vmem:[#allocation10 + $0x208] sm:$0xff]  ;;  %911 = vmatpush.msra.mxu3 %v781_v27  ;;  %v678_v12 = vld [vmem:[#allocation10 + $0x310] sm:$0xff] }
  0x82   : > { %v772_v29 = vld [vmem:[#allocation10 + $0x600] sm:$0xff]  ;;  %v773_v31 = vld [vmem:[#allocation10 + $0x608] sm:$0xff]  ;;  %843 = vmatpush.msra.mxu0 %v644_v28  ;;  %889 = vmatpush.msra.mxu2 %v645_v30  ;;  %v806_v13 = vld [vmem:[#allocation10 + $0x710] sm:$0xff] }
  0x83   : > { %v636_v32 = vld [vmem:[#allocation10 + $0x1c0] sm:$0xff]  ;;  %866 = vmatpush.msra.mxu1 %v772_v29  ;;  %v637_v34 = vld [vmem:[#allocation10 + $0x1c8] sm:$0xff]  ;;  %912 = vmatpush.msra.mxu3 %v773_v31  ;;  %v679_v14 = vld [vmem:[#allocation10 + $0x318] sm:$0xff] }
  0x84   : > { %v764_v33 = vld [vmem:[#allocation10 + $0x5c0] sm:$0xff]  ;;  %v765_v35 = vld [vmem:[#allocation10 + $0x5c8] sm:$0xff]  ;;  %844 = vmatpush.msra.mxu0 %v636_v32  ;;  %890 = vmatpush.msra.mxu2 %v637_v34  ;;  %v807_v15 = vld [vmem:[#allocation10 + $0x718] sm:$0xff] }
  0x85   : > { %v628_v36 = vld [vmem:[#allocation10 + $0x180] sm:$0xff]  ;;  %867 = vmatpush.msra.mxu1 %v764_v33  ;;  %v629_v38 = vld [vmem:[#allocation10 + $0x188] sm:$0xff]  ;;  %913 = vmatpush.msra.mxu3 %v765_v35  ;;  %v670_v16 = vld [vmem:[#allocation10 + $0x2d0] sm:$0xff] }
  0x86   : > { %v756_v37 = vld [vmem:[#allocation10 + $0x580] sm:$0xff]  ;;  %v757_v39 = vld [vmem:[#allocation10 + $0x588] sm:$0xff]  ;;  %845 = vmatpush.msra.mxu0 %v628_v36  ;;  %891 = vmatpush.msra.mxu2 %v629_v38  ;;  %v798_v17 = vld [vmem:[#allocation10 + $0x6d0] sm:$0xff] }
  0x87   : > { %v620_v40 = vld [vmem:[#allocation10 + $0x140] sm:$0xff]  ;;  %868 = vmatpush.msra.mxu1 %v756_v37  ;;  %v621_v42 = vld [vmem:[#allocation10 + $0x148] sm:$0xff]  ;;  %914 = vmatpush.msra.mxu3 %v757_v39  ;;  %v671_v18 = vld [vmem:[#allocation10 + $0x2d8] sm:$0xff] }
  0x88   : > { %v748_v41 = vld [vmem:[#allocation10 + $0x540] sm:$0xff]  ;;  %v749_v43 = vld [vmem:[#allocation10 + $0x548] sm:$0xff]  ;;  %846 = vmatpush.msra.mxu0 %v620_v40  ;;  %892 = vmatpush.msra.mxu2 %v621_v42  ;;  %v799_v19 = vld [vmem:[#allocation10 + $0x6d8] sm:$0xff] }
  0x89   : > { %v612_v44 = vld [vmem:[#allocation10 + $0x100] sm:$0xff]  ;;  %869 = vmatpush.msra.mxu1 %v748_v41  ;;  %v613_v46 = vld [vmem:[#allocation10 + $0x108] sm:$0xff]  ;;  %915 = vmatpush.msra.mxu3 %v749_v43  ;;  %v662_v20 = vld [vmem:[#allocation10 + $0x290] sm:$0xff] }
  0x8a   : > { %v740_v45 = vld [vmem:[#allocation10 + $0x500] sm:$0xff]  ;;  %v741_v47 = vld [vmem:[#allocation10 + $0x508] sm:$0xff]  ;;  %847 = vmatpush.msra.mxu0 %v612_v44  ;;  %893 = vmatpush.msra.mxu2 %v613_v46  ;;  %v790_v21 = vld [vmem:[#allocation10 + $0x690] sm:$0xff] }
  0x8b   : > { %v604_v48 = vld [vmem:[#allocation10 + $0xc0] sm:$0xff]  ;;  %870 = vmatpush.msra.mxu1 %v740_v45  ;;  %v605_v50 = vld [vmem:[#allocation10 + $0xc8] sm:$0xff]  ;;  %916 = vmatpush.msra.mxu3 %v741_v47  ;;  %v663_v22 = vld [vmem:[#allocation10 + $0x298] sm:$0xff] }
  0x8c   : > { %v732_v49 = vld [vmem:[#allocation10 + $0x4c0] sm:$0xff]  ;;  %v733_v51 = vld [vmem:[#allocation10 + $0x4c8] sm:$0xff]  ;;  %848 = vmatpush.msra.mxu0 %v604_v48  ;;  %894 = vmatpush.msra.mxu2 %v605_v50  ;;  %v791_v23 = vld [vmem:[#allocation10 + $0x698] sm:$0xff] }
  0x8d   : > { %v596_v52 = vld [vmem:[#allocation10 + $0x80] sm:$0xff]  ;;  %871 = vmatpush.msra.mxu1 %v732_v49  ;;  %v597_v54 = vld [vmem:[#allocation10 + $0x88] sm:$0xff]  ;;  %917 = vmatpush.msra.mxu3 %v733_v51  ;;  %v654_v24 = vld [vmem:[#allocation10 + $0x250] sm:$0xff] }
  0x8e   : > { %v724_v53 = vld [vmem:[#allocation10 + $0x480] sm:$0xff]  ;;  %v725_v55 = vld [vmem:[#allocation10 + $0x488] sm:$0xff]  ;;  %849 = vmatpush.msra.mxu0 %v596_v52  ;;  %895 = vmatpush.msra.mxu2 %v597_v54  ;;  %v782_v25 = vld [vmem:[#allocation10 + $0x650] sm:$0xff] }
  0x8f   : > { %v588_v56 = vld [vmem:[#allocation10 + $0x40] sm:$0xff]  ;;  %872 = vmatpush.msra.mxu1 %v724_v53  ;;  %v589_v58 = vld [vmem:[#allocation10 + $0x48] sm:$0xff]  ;;  %918 = vmatpush.msra.mxu3 %v725_v55  ;;  %v655_v26 = vld [vmem:[#allocation10 + $0x258] sm:$0xff] }
  0x90   : > { %v716_v57 = vld [vmem:[#allocation10 + $0x440] sm:$0xff]  ;;  %v717_v59 = vld [vmem:[#allocation10 + $0x448] sm:$0xff]  ;;  %850 = vmatpush.msra.mxu0 %v588_v56  ;;  %896 = vmatpush.msra.mxu2 %v589_v58  ;;  %v783_v27 = vld [vmem:[#allocation10 + $0x658] sm:$0xff] }
  0x91   : > { %v580_v60 = vld [vmem:[#allocation10] sm:$0xff]  ;;  %873 = vmatpush.msra.mxu1 %v716_v57  ;;  %v581_v62 = vld [vmem:[#allocation10 + $0x8] sm:$0xff]  ;;  %919 = vmatpush.msra.mxu3 %v717_v59  ;;  %v646_v28 = vld [vmem:[#allocation10 + $0x210] sm:$0xff] }
  0x92   : > { %v708_v61 = vld [vmem:[#allocation10 + $0x400] sm:$0xff]  ;;  %v709_v63 = vld [vmem:[#allocation10 + $0x408] sm:$0xff]  ;;  %851 = vmatpush.msra.mxu0 %v580_v60  ;;  %897 = vmatpush.msra.mxu2 %v581_v62  ;;  %v774_v29 = vld [vmem:[#allocation10 + $0x610] sm:$0xff] }
  0x93   : > { %874 = vmatpush.msra.mxu1 %v708_v61  ;;  %920 = vmatpush.msra.mxu3 %v709_v63  ;;  %v647_v30 = vld [vmem:[#allocation10 + $0x218] sm:$0xff]  ;;  %v638_v32 = vld [vmem:[#allocation10 + $0x1d0] sm:$0xff] }
  0x94   : > { %928 = vmatpush.msrb.mxu0 %v702_v0  ;;  %974 = vmatpush.msrb.mxu2 %v703_v2  ;;  %v775_v31 = vld [vmem:[#allocation10 + $0x618] sm:$0xff]  ;;  %v766_v33 = vld [vmem:[#allocation10 + $0x5d0] sm:$0xff]  ;;  %v2459_v0 = vld [vmem:[%s2441_s10] sm:$0xff] }
  0x95   : > { %951 = vmatpush.msrb.mxu1 %v830_v1  ;;  %997 = vmatpush.msrb.mxu3 %v831_v3  ;;  %v639_v34 = vld [vmem:[#allocation10 + $0x1d8] sm:$0xff]  ;;  %v630_v36 = vld [vmem:[#allocation10 + $0x190] sm:$0xff]  ;;  %v2462_v1 = vld [vmem:[%s2441_s10 + $0x8] sm:$0xff] }
  0x96   : > { %929 = vmatpush.msrb.mxu0 %v694_v4  ;;  %975 = vmatpush.msrb.mxu2 %v695_v6  ;;  %v767_v35 = vld [vmem:[#allocation10 + $0x5d8] sm:$0xff]  ;;  %v758_v37 = vld [vmem:[#allocation10 + $0x590] sm:$0xff]  ;;  %v704_v2 = vld [vmem:[#allocation10 + $0x3e0] sm:$0xff] }
  0x97   : > { %952 = vmatpush.msrb.mxu1 %v822_v5  ;;  %998 = vmatpush.msrb.mxu3 %v823_v7  ;;  %v631_v38 = vld [vmem:[#allocation10 + $0x198] sm:$0xff]  ;;  %v622_v40 = vld [vmem:[#allocation10 + $0x150] sm:$0xff]  ;;  %v832_v3 = vld [vmem:[#allocation10 + $0x7e0] sm:$0xff] }
  0x98   : > { %930 = vmatpush.msrb.mxu0 %v686_v8  ;;  %976 = vmatpush.msrb.mxu2 %v687_v10  ;;  %v759_v39 = vld [vmem:[#allocation10 + $0x598] sm:$0xff]  ;;  %v750_v41 = vld [vmem:[#allocation10 + $0x550] sm:$0xff]  ;;  %v705_v4 = vld [vmem:[#allocation10 + $0x3e8] sm:$0xff] }
  0x99   : > { %953 = vmatpush.msrb.mxu1 %v814_v9  ;;  %999 = vmatpush.msrb.mxu3 %v815_v11  ;;  %v623_v42 = vld [vmem:[#allocation10 + $0x158] sm:$0xff]  ;;  %v614_v44 = vld [vmem:[#allocation10 + $0x110] sm:$0xff]  ;;  %v833_v5 = vld [vmem:[#allocation10 + $0x7e8] sm:$0xff] }
  0x9a   : > { %931 = vmatpush.msrb.mxu0 %v678_v12  ;;  %977 = vmatpush.msrb.mxu2 %v679_v14  ;;  %v751_v43 = vld [vmem:[#allocation10 + $0x558] sm:$0xff]  ;;  %v742_v45 = vld [vmem:[#allocation10 + $0x510] sm:$0xff]  ;;  %v696_v6 = vld [vmem:[#allocation10 + $0x3a0] sm:$0xff] }
  0x9b   : > { %954 = vmatpush.msrb.mxu1 %v806_v13  ;;  %1000 = vmatpush.msrb.mxu3 %v807_v15  ;;  %v615_v46 = vld [vmem:[#allocation10 + $0x118] sm:$0xff]  ;;  %v606_v48 = vld [vmem:[#allocation10 + $0xd0] sm:$0xff]  ;;  %v824_v7 = vld [vmem:[#allocation10 + $0x7a0] sm:$0xff] }
  0x9c   : > { %932 = vmatpush.msrb.mxu0 %v670_v16  ;;  %978 = vmatpush.msrb.mxu2 %v671_v18  ;;  %v743_v47 = vld [vmem:[#allocation10 + $0x518] sm:$0xff]  ;;  %v734_v49 = vld [vmem:[#allocation10 + $0x4d0] sm:$0xff]  ;;  %v697_v8 = vld [vmem:[#allocation10 + $0x3a8] sm:$0xff] }
  0x9d   : > { %955 = vmatpush.msrb.mxu1 %v798_v17  ;;  %1001 = vmatpush.msrb.mxu3 %v799_v19  ;;  %v607_v50 = vld [vmem:[#allocation10 + $0xd8] sm:$0xff]  ;;  %v598_v52 = vld [vmem:[#allocation10 + $0x90] sm:$0xff]  ;;  %v825_v9 = vld [vmem:[#allocation10 + $0x7a8] sm:$0xff] }
  0x9e   : > { %933 = vmatpush.msrb.mxu0 %v662_v20  ;;  %979 = vmatpush.msrb.mxu2 %v663_v22  ;;  %v735_v51 = vld [vmem:[#allocation10 + $0x4d8] sm:$0xff]  ;;  %v726_v53 = vld [vmem:[#allocation10 + $0x490] sm:$0xff]  ;;  %v688_v10 = vld [vmem:[#allocation10 + $0x360] sm:$0xff] }
  0x9f   : > { %956 = vmatpush.msrb.mxu1 %v790_v21  ;;  %1002 = vmatpush.msrb.mxu3 %v791_v23  ;;  %v599_v54 = vld [vmem:[#allocation10 + $0x98] sm:$0xff]  ;;  %v590_v56 = vld [vmem:[#allocation10 + $0x50] sm:$0xff]  ;;  %v816_v11 = vld [vmem:[#allocation10 + $0x760] sm:$0xff] }
  0xa0   : > { %934 = vmatpush.msrb.mxu0 %v654_v24  ;;  %980 = vmatpush.msrb.mxu2 %v655_v26  ;;  %v727_v55 = vld [vmem:[#allocation10 + $0x498] sm:$0xff]  ;;  %v718_v57 = vld [vmem:[#allocation10 + $0x450] sm:$0xff]  ;;  %v689_v12 = vld [vmem:[#allocation10 + $0x368] sm:$0xff] }
  0xa1   : > { %957 = vmatpush.msrb.mxu1 %v782_v25  ;;  %1003 = vmatpush.msrb.mxu3 %v783_v27  ;;  %v591_v58 = vld [vmem:[#allocation10 + $0x58] sm:$0xff]  ;;  %v582_v60 = vld [vmem:[#allocation10 + $0x10] sm:$0xff]  ;;  %v817_v13 = vld [vmem:[#allocation10 + $0x768] sm:$0xff] }
  0xa2   : > { %935 = vmatpush.msrb.mxu0 %v646_v28  ;;  %981 = vmatpush.msrb.mxu2 %v647_v30  ;;  %v719_v59 = vld [vmem:[#allocation10 + $0x458] sm:$0xff]  ;;  %v710_v61 = vld [vmem:[#allocation10 + $0x410] sm:$0xff]  ;;  %v680_v14 = vld [vmem:[#allocation10 + $0x320] sm:$0xff] }
  0xa3   : > { %958 = vmatpush.msrb.mxu1 %v774_v29  ;;  %1004 = vmatpush.msrb.mxu3 %v775_v31  ;;  %v583_v62 = vld [vmem:[#allocation10 + $0x18] sm:$0xff]  ;;  %v808_v15 = vld [vmem:[#allocation10 + $0x720] sm:$0xff]  ;;  %v681_v16 = vld [vmem:[#allocation10 + $0x328] sm:$0xff] }
  0xa4   : > { %936 = vmatpush.msrb.mxu0 %v638_v32  ;;  %982 = vmatpush.msrb.mxu2 %v639_v34  ;;  %v711_v63 = vld [vmem:[#allocation10 + $0x418] sm:$0xff]  ;;  %v809_v17 = vld [vmem:[#allocation10 + $0x728] sm:$0xff]  ;;  %v672_v18 = vld [vmem:[#allocation10 + $0x2e0] sm:$0xff] }
  0xa5   : > { %959 = vmatpush.msrb.mxu1 %v766_v33  ;;  %1005 = vmatpush.msrb.mxu3 %v767_v35  ;;  %v800_v19 = vld [vmem:[#allocation10 + $0x6e0] sm:$0xff]  ;;  %v673_v20 = vld [vmem:[#allocation10 + $0x2e8] sm:$0xff] }
  0xa6   : > { %937 = vmatpush.msrb.mxu0 %v630_v36  ;;  %983 = vmatpush.msrb.mxu2 %v631_v38  ;;  %v801_v21 = vld [vmem:[#allocation10 + $0x6e8] sm:$0xff]  ;;  %v664_v22 = vld [vmem:[#allocation10 + $0x2a0] sm:$0xff] }
  0xa7   : > { %960 = vmatpush.msrb.mxu1 %v758_v37  ;;  %1006 = vmatpush.msrb.mxu3 %v759_v39  ;;  %v792_v23 = vld [vmem:[#allocation10 + $0x6a0] sm:$0xff]  ;;  %v665_v24 = vld [vmem:[#allocation10 + $0x2a8] sm:$0xff] }
  0xa8   : > { %938 = vmatpush.msrb.mxu0 %v622_v40  ;;  %984 = vmatpush.msrb.mxu2 %v623_v42  ;;  %v793_v25 = vld [vmem:[#allocation10 + $0x6a8] sm:$0xff]  ;;  %v656_v26 = vld [vmem:[#allocation10 + $0x260] sm:$0xff] }
  0xa9   : > { %961 = vmatpush.msrb.mxu1 %v750_v41  ;;  %1007 = vmatpush.msrb.mxu3 %v751_v43  ;;  %v784_v27 = vld [vmem:[#allocation10 + $0x660] sm:$0xff]  ;;  %v657_v28 = vld [vmem:[#allocation10 + $0x268] sm:$0xff] }
  0xaa   : > { %939 = vmatpush.msrb.mxu0 %v614_v44  ;;  %985 = vmatpush.msrb.mxu2 %v615_v46  ;;  %v785_v29 = vld [vmem:[#allocation10 + $0x668] sm:$0xff]  ;;  %v648_v30 = vld [vmem:[#allocation10 + $0x220] sm:$0xff] }
  0xab   : > { %962 = vmatpush.msrb.mxu1 %v742_v45  ;;  %1008 = vmatpush.msrb.mxu3 %v743_v47  ;;  %v776_v31 = vld [vmem:[#allocation10 + $0x620] sm:$0xff]  ;;  %v649_v32 = vld [vmem:[#allocation10 + $0x228] sm:$0xff] }
  0xac   : > { %940 = vmatpush.msrb.mxu0 %v606_v48  ;;  %986 = vmatpush.msrb.mxu2 %v607_v50  ;;  %v777_v33 = vld [vmem:[#allocation10 + $0x628] sm:$0xff]  ;;  %v640_v34 = vld [vmem:[#allocation10 + $0x1e0] sm:$0xff]  ;;  %v2469_v50 = vld [vmem:[%s2441_s10 + $0x10] sm:$0xff] }
  0xad   : > { %963 = vmatpush.msrb.mxu1 %v734_v49  ;;  %1009 = vmatpush.msrb.mxu3 %v735_v51  ;;  %v768_v35 = vld [vmem:[#allocation10 + $0x5e0] sm:$0xff]  ;;  %v641_v36 = vld [vmem:[#allocation10 + $0x1e8] sm:$0xff]  ;;  %v2472_v51 = vld [vmem:[%s2441_s10 + $0x18] sm:$0xff] }
  0xae   : > { %941 = vmatpush.msrb.mxu0 %v598_v52  ;;  %987 = vmatpush.msrb.mxu2 %v599_v54  ;;  %v769_v37 = vld [vmem:[#allocation10 + $0x5e8] sm:$0xff]  ;;  %v632_v38 = vld [vmem:[#allocation10 + $0x1a0] sm:$0xff] }
  0xaf   : > { %964 = vmatpush.msrb.mxu1 %v726_v53  ;;  %1010 = vmatpush.msrb.mxu3 %v727_v55  ;;  %v760_v39 = vld [vmem:[#allocation10 + $0x5a0] sm:$0xff]  ;;  %v633_v40 = vld [vmem:[#allocation10 + $0x1a8] sm:$0xff] }
  0xb0   : > { %942 = vmatpush.msrb.mxu0 %v590_v56  ;;  %988 = vmatpush.msrb.mxu2 %v591_v58  ;;  %v761_v41 = vld [vmem:[#allocation10 + $0x5a8] sm:$0xff]  ;;  %v624_v42 = vld [vmem:[#allocation10 + $0x160] sm:$0xff] }
  0xb1   : > { %965 = vmatpush.msrb.mxu1 %v718_v57  ;;  %1011 = vmatpush.msrb.mxu3 %v719_v59  ;;  %v752_v43 = vld [vmem:[#allocation10 + $0x560] sm:$0xff]  ;;  %v625_v44 = vld [vmem:[#allocation10 + $0x168] sm:$0xff] }
  0xb2   : > { %943 = vmatpush.msrb.mxu0 %v582_v60  ;;  %989 = vmatpush.msrb.mxu2 %v583_v62  ;;  %v753_v45 = vld [vmem:[#allocation10 + $0x568] sm:$0xff]  ;;  %v616_v46 = vld [vmem:[#allocation10 + $0x120] sm:$0xff] }
  0xb3   : > { %966 = vmatpush.msrb.mxu1 %v710_v61  ;;  %1012 = vmatpush.msrb.mxu3 %v711_v63  ;;  %v744_v47 = vld [vmem:[#allocation10 + $0x520] sm:$0xff]  ;;  %v617_v48 = vld [vmem:[#allocation10 + $0x128] sm:$0xff] }
  0xb4   : > { %852 = vmatmul.f32.vlgmr.msra.gmra.mxu0 %v2459_v0  ;;  %875 = vmatmul.f32.vlgmr.msra.gmra.mxu1 %v2462_v1  ;;  %v745_v49 = vld [vmem:[#allocation10 + $0x528] sm:$0xff]  ;;  %v608_v52 = vld [vmem:[#allocation10 + $0xe0] sm:$0xff] }
  0xb5   : > { %898 = vmatmul.f32.vlgmr.msra.gmra.mxu2 %v2459_v0  ;;  %921 = vmatmul.f32.vlgmr.msra.gmra.mxu3 %v2462_v1  ;;  %v736_v53 = vld [vmem:[#allocation10 + $0x4e0] sm:$0xff]  ;;  %v609_v54 = vld [vmem:[#allocation10 + $0xe8] sm:$0xff] }
  0xb6   : > { %1020 = vmatpush.msra.mxu0 %v704_v2  ;;  %1043 = vmatpush.msra.mxu1 %v832_v3  ;;  %v737_v55 = vld [vmem:[#allocation10 + $0x4e8] sm:$0xff]  ;;  %v600_v56 = vld [vmem:[#allocation10 + $0xa0] sm:$0xff] }
  0xb7   : > { %1066 = vmatpush.msra.mxu2 %v705_v4  ;;  %1089 = vmatpush.msra.mxu3 %v833_v5  ;;  %v728_v57 = vld [vmem:[#allocation10 + $0x4a0] sm:$0xff]  ;;  %v601_v58 = vld [vmem:[#allocation10 + $0xa8] sm:$0xff] }
  0xb8   : > { %1021 = vmatpush.msra.mxu0 %v696_v6  ;;  %1044 = vmatpush.msra.mxu1 %v824_v7  ;;  %v729_v59 = vld [vmem:[#allocation10 + $0x4a8] sm:$0xff]  ;;  %v592_v60 = vld [vmem:[#allocation10 + $0x60] sm:$0xff]  ;;  %v706_v6 = vld [vmem:[#allocation10 + $0x3f0] sm:$0xff] }
  0xb9   : > { %1067 = vmatpush.msra.mxu2 %v697_v8  ;;  %1090 = vmatpush.msra.mxu3 %v825_v9  ;;  %v720_v61 = vld [vmem:[#allocation10 + $0x460] sm:$0xff]  ;;  %v593_v62 = vld [vmem:[#allocation10 + $0x68] sm:$0xff]  ;;  %v834_v7 = vld [vmem:[#allocation10 + $0x7f0] sm:$0xff] }
  0xba   : > { %1022 = vmatpush.msra.mxu0 %v688_v10  ;;  %1045 = vmatpush.msra.mxu1 %v816_v11  ;;  %v721_v63 = vld [vmem:[#allocation10 + $0x468] sm:$0xff]  ;;  %v584_v2 = vld [vmem:[#allocation10 + $0x20] sm:$0xff]  ;;  %v707_v8 = vld [vmem:[#allocation10 + $0x3f8] sm:$0xff] }
  0xbb   : > { %1068 = vmatpush.msra.mxu2 %v689_v12  ;;  %1091 = vmatpush.msra.mxu3 %v817_v13  ;;  %v712_v3 = vld [vmem:[#allocation10 + $0x420] sm:$0xff]  ;;  %v585_v4 = vld [vmem:[#allocation10 + $0x28] sm:$0xff]  ;;  %v835_v9 = vld [vmem:[#allocation10 + $0x7f8] sm:$0xff] }
  0xbc   : > { %1023 = vmatpush.msra.mxu0 %v680_v14  ;;  %1046 = vmatpush.msra.mxu1 %v808_v15  ;;  %v713_v5 = vld [vmem:[#allocation10 + $0x428] sm:$0xff]  ;;  %v698_v10 = vld [vmem:[#allocation10 + $0x3b0] sm:$0xff]  ;;  %v699_v12 = vld [vmem:[#allocation10 + $0x3b8] sm:$0xff] }
  0xbd   : > { %1069 = vmatpush.msra.mxu2 %v681_v16  ;;  %1092 = vmatpush.msra.mxu3 %v809_v17  ;;  %v826_v11 = vld [vmem:[#allocation10 + $0x7b0] sm:$0xff]  ;;  %v827_v13 = vld [vmem:[#allocation10 + $0x7b8] sm:$0xff] }
  0xbe   : > { %1024 = vmatpush.msra.mxu0 %v672_v18  ;;  %1047 = vmatpush.msra.mxu1 %v800_v19  ;;  %v690_v14 = vld [vmem:[#allocation10 + $0x370] sm:$0xff]  ;;  %v691_v16 = vld [vmem:[#allocation10 + $0x378] sm:$0xff] }
  0xbf   : > { %1070 = vmatpush.msra.mxu2 %v673_v20  ;;  %1093 = vmatpush.msra.mxu3 %v801_v21  ;;  %v818_v15 = vld [vmem:[#allocation10 + $0x770] sm:$0xff]  ;;  %v819_v17 = vld [vmem:[#allocation10 + $0x778] sm:$0xff] }
  0xc0   : > { %1025 = vmatpush.msra.mxu0 %v664_v22  ;;  %1048 = vmatpush.msra.mxu1 %v792_v23  ;;  %v682_v18 = vld [vmem:[#allocation10 + $0x330] sm:$0xff]  ;;  %v683_v20 = vld [vmem:[#allocation10 + $0x338] sm:$0xff] }
  0xc1   : > { %1071 = vmatpush.msra.mxu2 %v665_v24  ;;  %1094 = vmatpush.msra.mxu3 %v793_v25  ;;  %v810_v19 = vld [vmem:[#allocation10 + $0x730] sm:$0xff]  ;;  %v811_v21 = vld [vmem:[#allocation10 + $0x738] sm:$0xff] }
  0xc2   : > { %1026 = vmatpush.msra.mxu0 %v656_v26  ;;  %1049 = vmatpush.msra.mxu1 %v784_v27  ;;  %v674_v22 = vld [vmem:[#allocation10 + $0x2f0] sm:$0xff]  ;;  %v675_v24 = vld [vmem:[#allocation10 + $0x2f8] sm:$0xff] }
  0xc3   : > { %1072 = vmatpush.msra.mxu2 %v657_v28  ;;  %1095 = vmatpush.msra.mxu3 %v785_v29  ;;  %v802_v23 = vld [vmem:[#allocation10 + $0x6f0] sm:$0xff]  ;;  %v803_v25 = vld [vmem:[#allocation10 + $0x6f8] sm:$0xff] }
  0xc4   : > { %1027 = vmatpush.msra.mxu0 %v648_v30  ;;  %1050 = vmatpush.msra.mxu1 %v776_v31  ;;  %v666_v26 = vld [vmem:[#allocation10 + $0x2b0] sm:$0xff]  ;;  %v667_v28 = vld [vmem:[#allocation10 + $0x2b8] sm:$0xff] }
  0xc5   : > { %1073 = vmatpush.msra.mxu2 %v649_v32  ;;  %1096 = vmatpush.msra.mxu3 %v777_v33  ;;  %v794_v27 = vld [vmem:[#allocation10 + $0x6b0] sm:$0xff]  ;;  %v795_v29 = vld [vmem:[#allocation10 + $0x6b8] sm:$0xff] }
  0xc6   : > { %1028 = vmatpush.msra.mxu0 %v640_v34  ;;  %1051 = vmatpush.msra.mxu1 %v768_v35  ;;  %v658_v30 = vld [vmem:[#allocation10 + $0x270] sm:$0xff]  ;;  %v659_v32 = vld [vmem:[#allocation10 + $0x278] sm:$0xff] }
  0xc7   : > { %1074 = vmatpush.msra.mxu2 %v641_v36  ;;  %1097 = vmatpush.msra.mxu3 %v769_v37  ;;  %v786_v31 = vld [vmem:[#allocation10 + $0x670] sm:$0xff]  ;;  %v787_v33 = vld [vmem:[#allocation10 + $0x678] sm:$0xff] }
  0xc8   : > { %1029 = vmatpush.msra.mxu0 %v632_v38  ;;  %1052 = vmatpush.msra.mxu1 %v760_v39  ;;  %v650_v34 = vld [vmem:[#allocation10 + $0x230] sm:$0xff]  ;;  %v651_v36 = vld [vmem:[#allocation10 + $0x238] sm:$0xff] }
  0xc9   : > { %1075 = vmatpush.msra.mxu2 %v633_v40  ;;  %1098 = vmatpush.msra.mxu3 %v761_v41  ;;  %v778_v35 = vld [vmem:[#allocation10 + $0x630] sm:$0xff]  ;;  %v779_v37 = vld [vmem:[#allocation10 + $0x638] sm:$0xff] }
  0xca   : > { %1030 = vmatpush.msra.mxu0 %v624_v42  ;;  %1053 = vmatpush.msra.mxu1 %v752_v43  ;;  %v642_v38 = vld [vmem:[#allocation10 + $0x1f0] sm:$0xff]  ;;  %v643_v40 = vld [vmem:[#allocation10 + $0x1f8] sm:$0xff] }
  0xcb   : > { %1076 = vmatpush.msra.mxu2 %v625_v44  ;;  %1099 = vmatpush.msra.mxu3 %v753_v45  ;;  %v770_v39 = vld [vmem:[#allocation10 + $0x5f0] sm:$0xff]  ;;  %v771_v41 = vld [vmem:[#allocation10 + $0x5f8] sm:$0xff] }
  0xcc   : > { %1031 = vmatpush.msra.mxu0 %v616_v46  ;;  %1054 = vmatpush.msra.mxu1 %v744_v47  ;;  %v634_v42 = vld [vmem:[#allocation10 + $0x1b0] sm:$0xff]  ;;  %v635_v44 = vld [vmem:[#allocation10 + $0x1b8] sm:$0xff] }
  0xcd   : > { %1077 = vmatpush.msra.mxu2 %v617_v48  ;;  %1100 = vmatpush.msra.mxu3 %v745_v49  ;;  %v762_v43 = vld [vmem:[#allocation10 + $0x5b0] sm:$0xff]  ;;  %v763_v45 = vld [vmem:[#allocation10 + $0x5b8] sm:$0xff] }
  0xce   : > { %855 = vmatmul.f32.gmra.mxu0 %v2469_v50  ;;  %878 = vmatmul.f32.gmra.mxu1 %v2472_v51  ;;  %v626_v46 = vld [vmem:[#allocation10 + $0x170] sm:$0xff]  ;;  %v627_v48 = vld [vmem:[#allocation10 + $0x178] sm:$0xff] }
  0xcf   : > { %901 = vmatmul.f32.gmra.mxu2 %v2469_v50  ;;  %924 = vmatmul.f32.gmra.mxu3 %v2472_v51  ;;  %v754_v47 = vld [vmem:[#allocation10 + $0x570] sm:$0xff]  ;;  %v755_v49 = vld [vmem:[#allocation10 + $0x578] sm:$0xff] }
  0xd0   : > { %1032 = vmatpush.msra.mxu0 %v608_v52  ;;  %1055 = vmatpush.msra.mxu1 %v736_v53  ;;  %v618_v52 = vld [vmem:[#allocation10 + $0x130] sm:$0xff] }
  0xd1   : > { %1078 = vmatpush.msra.mxu2 %v609_v54  ;;  %1101 = vmatpush.msra.mxu3 %v737_v55  ;;  %v746_v53 = vld [vmem:[#allocation10 + $0x530] sm:$0xff]  ;;  %v619_v54 = vld [vmem:[#allocation10 + $0x138] sm:$0xff] }
  0xd2   : > { %1033 = vmatpush.msra.mxu0 %v600_v56  ;;  %1056 = vmatpush.msra.mxu1 %v728_v57  ;;  %v747_v55 = vld [vmem:[#allocation10 + $0x538] sm:$0xff]  ;;  %v610_v56 = vld [vmem:[#allocation10 + $0xf0] sm:$0xff] }
  0xd3   : > { %1079 = vmatpush.msra.mxu2 %v601_v58  ;;  %1102 = vmatpush.msra.mxu3 %v729_v59  ;;  %v738_v57 = vld [vmem:[#allocation10 + $0x4f0] sm:$0xff]  ;;  %v611_v58 = vld [vmem:[#allocation10 + $0xf8] sm:$0xff] }
  0xd4   : > { %1034 = vmatpush.msra.mxu0 %v592_v60  ;;  %1057 = vmatpush.msra.mxu1 %v720_v61  ;;  %v739_v59 = vld [vmem:[#allocation10 + $0x4f8] sm:$0xff]  ;;  %v602_v60 = vld [vmem:[#allocation10 + $0xb0] sm:$0xff] }
  0xd5   : > { %1080 = vmatpush.msra.mxu2 %v593_v62  ;;  %1103 = vmatpush.msra.mxu3 %v721_v63  ;;  %v730_v61 = vld [vmem:[#allocation10 + $0x4b0] sm:$0xff]  ;;  %v603_v62 = vld [vmem:[#allocation10 + $0xb8] sm:$0xff] }
  0xd6   : > { %1035 = vmatpush.msra.mxu0 %v584_v2  ;;  %1058 = vmatpush.msra.mxu1 %v712_v3  ;;  %v731_v63 = vld [vmem:[#allocation10 + $0x4b8] sm:$0xff]  ;;  %v594_v2 = vld [vmem:[#allocation10 + $0x70] sm:$0xff] }
  0xd7   : > { %1081 = vmatpush.msra.mxu2 %v585_v4  ;;  %1104 = vmatpush.msra.mxu3 %v713_v5  ;;  %v722_v3 = vld [vmem:[#allocation10 + $0x470] sm:$0xff]  ;;  %v595_v4 = vld [vmem:[#allocation10 + $0x78] sm:$0xff] }
  0xd8   : > { %944 = vmatmul.f32.vlgmr.msrb.gmra.mxu0 %v2459_v0  ;;  %967 = vmatmul.f32.vlgmr.msrb.gmra.mxu1 %v2462_v1  ;;  %v723_v5 = vld [vmem:[#allocation10 + $0x478] sm:$0xff] }
  0xd9   : > { %990 = vmatmul.f32.vlgmr.msrb.gmra.mxu2 %v2459_v0  ;;  %1013 = vmatmul.f32.vlgmr.msrb.gmra.mxu3 %v2462_v1 }
  0xda   : > { %1112 = vmatpush.msrb.mxu0 %v706_v6  ;;  %1135 = vmatpush.msrb.mxu1 %v834_v7  ;;  %v586_v6 = vld [vmem:[#allocation10 + $0x30] sm:$0xff] }
  0xdb   : > { %1158 = vmatpush.msrb.mxu2 %v707_v8  ;;  %1181 = vmatpush.msrb.mxu3 %v835_v9  ;;  %v714_v7 = vld [vmem:[#allocation10 + $0x430] sm:$0xff]  ;;  %v587_v8 = vld [vmem:[#allocation10 + $0x38] sm:$0xff] }
  0xdc   : > { %1113 = vmatpush.msrb.mxu0 %v698_v10  ;;  %1136 = vmatpush.msrb.mxu1 %v826_v11  ;;  %v715_v9 = vld [vmem:[#allocation10 + $0x438] sm:$0xff]  ;;  %v568_v10 = vld [vmem:[#allocation8 + $0x3c0] sm:$0xff]  ;;  %v569_v11 = vld [vmem:[#allocation8 + $0x3c8] sm:$0xff] }
  0xdd   : > { %1159 = vmatpush.msrb.mxu2 %v699_v12  ;;  %1182 = vmatpush.msrb.mxu3 %v827_v13  ;;  %v570_v12 = vld [vmem:[#allocation8 + $0x3d0] sm:$0xff]  ;;  %v571_v13 = vld [vmem:[#allocation8 + $0x3d8] sm:$0xff] }
  0xde   : > { %1114 = vmatpush.msrb.mxu0 %v690_v14  ;;  %1137 = vmatpush.msrb.mxu1 %v818_v15  ;;  %v560_v14 = vld [vmem:[#allocation8 + $0x380] sm:$0xff]  ;;  %v561_v15 = vld [vmem:[#allocation8 + $0x388] sm:$0xff] }
  0xdf   : > { %1160 = vmatpush.msrb.mxu2 %v691_v16  ;;  %1183 = vmatpush.msrb.mxu3 %v819_v17  ;;  %v562_v16 = vld [vmem:[#allocation8 + $0x390] sm:$0xff]  ;;  %v563_v17 = vld [vmem:[#allocation8 + $0x398] sm:$0xff] }
  0xe0   : > { %1115 = vmatpush.msrb.mxu0 %v682_v18  ;;  %1138 = vmatpush.msrb.mxu1 %v810_v19  ;;  %v552_v18 = vld [vmem:[#allocation8 + $0x340] sm:$0xff]  ;;  %v553_v19 = vld [vmem:[#allocation8 + $0x348] sm:$0xff] }
  0xe1   : > { %1161 = vmatpush.msrb.mxu2 %v683_v20  ;;  %1184 = vmatpush.msrb.mxu3 %v811_v21  ;;  %v554_v20 = vld [vmem:[#allocation8 + $0x350] sm:$0xff]  ;;  %v555_v21 = vld [vmem:[#allocation8 + $0x358] sm:$0xff] }
  0xe2   : > { %1116 = vmatpush.msrb.mxu0 %v674_v22  ;;  %1139 = vmatpush.msrb.mxu1 %v802_v23  ;;  %v544_v22 = vld [vmem:[#allocation8 + $0x300] sm:$0xff]  ;;  %v545_v23 = vld [vmem:[#allocation8 + $0x308] sm:$0xff] }
  0xe3   : > { %1162 = vmatpush.msrb.mxu2 %v675_v24  ;;  %1185 = vmatpush.msrb.mxu3 %v803_v25  ;;  %v546_v24 = vld [vmem:[#allocation8 + $0x310] sm:$0xff]  ;;  %v547_v25 = vld [vmem:[#allocation8 + $0x318] sm:$0xff] }
  0xe4   : > { %1117 = vmatpush.msrb.mxu0 %v666_v26  ;;  %1140 = vmatpush.msrb.mxu1 %v794_v27  ;;  %v536_v26 = vld [vmem:[#allocation8 + $0x2c0] sm:$0xff]  ;;  %v537_v27 = vld [vmem:[#allocation8 + $0x2c8] sm:$0xff] }
  0xe5   : > { %1163 = vmatpush.msrb.mxu2 %v667_v28  ;;  %1186 = vmatpush.msrb.mxu3 %v795_v29  ;;  %v538_v28 = vld [vmem:[#allocation8 + $0x2d0] sm:$0xff]  ;;  %v539_v29 = vld [vmem:[#allocation8 + $0x2d8] sm:$0xff] }
  0xe6   : > { %1118 = vmatpush.msrb.mxu0 %v658_v30  ;;  %1141 = vmatpush.msrb.mxu1 %v786_v31  ;;  %v528_v30 = vld [vmem:[#allocation8 + $0x280] sm:$0xff]  ;;  %v529_v31 = vld [vmem:[#allocation8 + $0x288] sm:$0xff] }
  0xe7   : > { %1164 = vmatpush.msrb.mxu2 %v659_v32  ;;  %1187 = vmatpush.msrb.mxu3 %v787_v33  ;;  %v530_v32 = vld [vmem:[#allocation8 + $0x290] sm:$0xff]  ;;  %v531_v33 = vld [vmem:[#allocation8 + $0x298] sm:$0xff] }
  0xe8   : > { %1119 = vmatpush.msrb.mxu0 %v650_v34  ;;  %1142 = vmatpush.msrb.mxu1 %v778_v35  ;;  %v520_v34 = vld [vmem:[#allocation8 + $0x240] sm:$0xff]  ;;  %v521_v35 = vld [vmem:[#allocation8 + $0x248] sm:$0xff] }
  0xe9   : > { %1165 = vmatpush.msrb.mxu2 %v651_v36  ;;  %1188 = vmatpush.msrb.mxu3 %v779_v37  ;;  %v522_v36 = vld [vmem:[#allocation8 + $0x250] sm:$0xff]  ;;  %v523_v37 = vld [vmem:[#allocation8 + $0x258] sm:$0xff] }
  0xea   : > { %1120 = vmatpush.msrb.mxu0 %v642_v38  ;;  %1143 = vmatpush.msrb.mxu1 %v770_v39  ;;  %v512_v38 = vld [vmem:[#allocation8 + $0x200] sm:$0xff]  ;;  %v513_v39 = vld [vmem:[#allocation8 + $0x208] sm:$0xff] }
  0xeb   : > { %1166 = vmatpush.msrb.mxu2 %v643_v40  ;;  %1189 = vmatpush.msrb.mxu3 %v771_v41  ;;  %v514_v40 = vld [vmem:[#allocation8 + $0x210] sm:$0xff]  ;;  %v515_v41 = vld [vmem:[#allocation8 + $0x218] sm:$0xff] }
  0xec   : > { %1121 = vmatpush.msrb.mxu0 %v634_v42  ;;  %1144 = vmatpush.msrb.mxu1 %v762_v43  ;;  %v504_v42 = vld [vmem:[#allocation8 + $0x1c0] sm:$0xff]  ;;  %v505_v43 = vld [vmem:[#allocation8 + $0x1c8] sm:$0xff] }
  0xed   : > { %1167 = vmatpush.msrb.mxu2 %v635_v44  ;;  %1190 = vmatpush.msrb.mxu3 %v763_v45  ;;  %v506_v44 = vld [vmem:[#allocation8 + $0x1d0] sm:$0xff]  ;;  %v507_v45 = vld [vmem:[#allocation8 + $0x1d8] sm:$0xff] }
  0xee   : > { %1122 = vmatpush.msrb.mxu0 %v626_v46  ;;  %1145 = vmatpush.msrb.mxu1 %v754_v47  ;;  %v496_v46 = vld [vmem:[#allocation8 + $0x180] sm:$0xff]  ;;  %v497_v47 = vld [vmem:[#allocation8 + $0x188] sm:$0xff] }
  0xef   : > { %1168 = vmatpush.msrb.mxu2 %v627_v48  ;;  %1191 = vmatpush.msrb.mxu3 %v755_v49  ;;  %v498_v48 = vld [vmem:[#allocation8 + $0x190] sm:$0xff]  ;;  %v499_v49 = vld [vmem:[#allocation8 + $0x198] sm:$0xff] }
  0xf0   : > { %947 = vmatmul.f32.gmra.mxu0 %v2469_v50  ;;  %970 = vmatmul.f32.gmra.mxu1 %v2472_v51 }
  0xf1   : > { %993 = vmatmul.f32.gmra.mxu2 %v2469_v50  ;;  %1016 = vmatmul.f32.gmra.mxu3 %v2472_v51 }
  0xf2   : > { %1123 = vmatpush.msrb.mxu0 %v618_v52  ;;  %1146 = vmatpush.msrb.mxu1 %v746_v53  ;;  %v488_v52 = vld [vmem:[#allocation8 + $0x140] sm:$0xff]  ;;  %v489_v53 = vld [vmem:[#allocation8 + $0x148] sm:$0xff] }
  0xf3   : > { %1169 = vmatpush.msrb.mxu2 %v619_v54  ;;  %1192 = vmatpush.msrb.mxu3 %v747_v55  ;;  %v490_v54 = vld [vmem:[#allocation8 + $0x150] sm:$0xff]  ;;  %v491_v55 = vld [vmem:[#allocation8 + $0x158] sm:$0xff] }
  0xf4   : > { %1124 = vmatpush.msrb.mxu0 %v610_v56  ;;  %1147 = vmatpush.msrb.mxu1 %v738_v57  ;;  %v480_v56 = vld [vmem:[#allocation8 + $0x100] sm:$0xff]  ;;  %v483_v57 = vld [vmem:[#allocation8 + $0x118] sm:$0xff] }
  0xf5   : > { %1170 = vmatpush.msrb.mxu2 %v611_v58  ;;  %1193 = vmatpush.msrb.mxu3 %v739_v59  ;;  %v472_v58 = vld [vmem:[#allocation8 + $0xc0] sm:$0xff]  ;;  %v473_v59 = vld [vmem:[#allocation8 + $0xc8] sm:$0xff] }
  0xf6   : > { %1125 = vmatpush.msrb.mxu0 %v602_v60  ;;  %1148 = vmatpush.msrb.mxu1 %v730_v61  ;;  %v474_v60 = vld [vmem:[#allocation8 + $0xd0] sm:$0xff]  ;;  %v475_v61 = vld [vmem:[#allocation8 + $0xd8] sm:$0xff] }
  0xf7   : > { %1171 = vmatpush.msrb.mxu2 %v603_v62  ;;  %1194 = vmatpush.msrb.mxu3 %v731_v63  ;;  %v464_v62 = vld [vmem:[#allocation8 + $0x80] sm:$0xff]  ;;  %v465_v63 = vld [vmem:[#allocation8 + $0x88] sm:$0xff] }
  0xf8   : > { %1126 = vmatpush.msrb.mxu0 %v594_v2  ;;  %1149 = vmatpush.msrb.mxu1 %v722_v3  ;;  %v466_v2 = vld [vmem:[#allocation8 + $0x90] sm:$0xff]  ;;  %v467_v3 = vld [vmem:[#allocation8 + $0x98] sm:$0xff] }
  0xf9   : > { %1172 = vmatpush.msrb.mxu2 %v595_v4  ;;  %1195 = vmatpush.msrb.mxu3 %v723_v5  ;;  %v456_v4 = vld [vmem:[#allocation8 + $0x40] sm:$0xff]  ;;  %v457_v5 = vld [vmem:[#allocation8 + $0x48] sm:$0xff] }
  0xfa   : > { %1036 = vmatmul.f32.vlgmr.msra.gmra.mxu0 %v2459_v0  ;;  %1059 = vmatmul.f32.vlgmr.msra.gmra.mxu1 %v2462_v1 }
  0xfb   : > { %1082 = vmatmul.f32.vlgmr.msra.gmra.mxu2 %v2459_v0  ;;  %1105 = vmatmul.f32.vlgmr.msra.gmra.mxu3 %v2462_v1 }
  0xfc   : > { %1127 = vmatpush.msrb.mxu0 %v586_v6  ;;  %1150 = vmatpush.msrb.mxu1 %v714_v7  ;;  %v458_v6 = vld [vmem:[#allocation8 + $0x50] sm:$0xff]  ;;  %v459_v7 = vld [vmem:[#allocation8 + $0x58] sm:$0xff] }
  0xfd   : > { %1173 = vmatpush.msrb.mxu2 %v587_v8  ;;  %1196 = vmatpush.msrb.mxu3 %v715_v9  ;;  %v449_v8 = vld [vmem:[#allocation8 + $0x8] sm:$0xff]  ;;  %v451_v9 = vld [vmem:[#allocation8 + $0x18] sm:$0xff] }
  0xfe   : > { %1204 = vmatpush.msra.mxu0 %v568_v10  ;;  %1227 = vmatpush.msra.mxu1 %v569_v11  ;;  %v2503_v10 = vld [vmem:[%s2430_s15] sm:$0xff] }
  0xff   : > { %1250 = vmatpush.msra.mxu2 %v570_v12  ;;  %1273 = vmatpush.msra.mxu3 %v571_v13  ;;  %v572_v11 = vld [vmem:[#allocation8 + $0x3e0] sm:$0xff]  ;;  %v573_v12 = vld [vmem:[#allocation8 + $0x3e8] sm:$0xff]  ;;  %v574_v13 = vld [vmem:[#allocation8 + $0x3f0] sm:$0xff] }
 0x100   : > { %1205 = vmatpush.msra.mxu0 %v560_v14  ;;  %1228 = vmatpush.msra.mxu1 %v561_v15  ;;  %v575_v14 = vld [vmem:[#allocation8 + $0x3f8] sm:$0xff]  ;;  %v564_v15 = vld [vmem:[#allocation8 + $0x3a0] sm:$0xff] }
 0x101   : > { %1251 = vmatpush.msra.mxu2 %v562_v16  ;;  %1274 = vmatpush.msra.mxu3 %v563_v17  ;;  %v565_v16 = vld [vmem:[#allocation8 + $0x3a8] sm:$0xff]  ;;  %v566_v17 = vld [vmem:[#allocation8 + $0x3b0] sm:$0xff] }
 0x102   : > { %1206 = vmatpush.msra.mxu0 %v552_v18  ;;  %1229 = vmatpush.msra.mxu1 %v553_v19  ;;  %v567_v18 = vld [vmem:[#allocation8 + $0x3b8] sm:$0xff]  ;;  %v556_v19 = vld [vmem:[#allocation8 + $0x360] sm:$0xff] }
 0x103   : > { %1252 = vmatpush.msra.mxu2 %v554_v20  ;;  %1275 = vmatpush.msra.mxu3 %v555_v21  ;;  %v557_v20 = vld [vmem:[#allocation8 + $0x368] sm:$0xff]  ;;  %v558_v21 = vld [vmem:[#allocation8 + $0x370] sm:$0xff] }
 0x104   : > { %1207 = vmatpush.msra.mxu0 %v544_v22  ;;  %1230 = vmatpush.msra.mxu1 %v545_v23  ;;  %v559_v22 = vld [vmem:[#allocation8 + $0x378] sm:$0xff]  ;;  %v548_v23 = vld [vmem:[#allocation8 + $0x320] sm:$0xff] }
 0x105   : > { %1253 = vmatpush.msra.mxu2 %v546_v24  ;;  %1276 = vmatpush.msra.mxu3 %v547_v25  ;;  %v549_v24 = vld [vmem:[#allocation8 + $0x328] sm:$0xff]  ;;  %v550_v25 = vld [vmem:[#allocation8 + $0x330] sm:$0xff] }
 0x106   : > { %1039 = vmatmul.f32.gmra.mxu0 %v2469_v50  ;;  %1062 = vmatmul.f32.gmra.mxu1 %v2472_v51 }
 0x107   : > { %1085 = vmatmul.f32.gmra.mxu2 %v2469_v50  ;;  %1108 = vmatmul.f32.gmra.mxu3 %v2472_v51 }
 0x108   : > { %1208 = vmatpush.msra.mxu0 %v536_v26  ;;  %1231 = vmatpush.msra.mxu1 %v537_v27  ;;  %v551_v26 = vld [vmem:[#allocation8 + $0x338] sm:$0xff] }
 0x109   : > { %1254 = vmatpush.msra.mxu2 %v538_v28  ;;  %1277 = vmatpush.msra.mxu3 %v539_v29  ;;  %v2510_v27 = vld [vmem:[%s2430_s15 + $0x8] sm:$0xff]  ;;  %v540_v28 = vld [vmem:[#allocation8 + $0x2e0] sm:$0xff]  ;;  %s2109_s15 = scalar_lea.hbm %s2671_s7, 64 }
 0x10a   : > { %1209 = vmatpush.msra.mxu0 %v528_v30  ;;  %1232 = vmatpush.msra.mxu1 %v529_v31  ;;  %v541_v29 = vld [vmem:[#allocation8 + $0x2e8] sm:$0xff]  ;;  %v542_v30 = vld [vmem:[#allocation8 + $0x2f0] sm:$0xff]  ;;  %v543_v31 = vld [vmem:[#allocation8 + $0x2f8] sm:$0xff]  ;;  %p2111_p2 = scmp.lt.s32.totalorder %s2109_s15, %s2105_s6 }
 0x10b   : > { %1255 = vmatpush.msra.mxu2 %v530_v32  ;;  %1278 = vmatpush.msra.mxu3 %v531_v33  ;;  %v532_v32 = vld [vmem:[#allocation8 + $0x2a0] sm:$0xff]  ;;  %v533_v33 = vld [vmem:[#allocation8 + $0x2a8] sm:$0xff] }
 0x10c   : > { %1210 = vmatpush.msra.mxu0 %v520_v34  ;;  %1233 = vmatpush.msra.mxu1 %v521_v35  ;;  %v534_v34 = vld [vmem:[#allocation8 + $0x2b0] sm:$0xff]  ;;  %v535_v35 = vld [vmem:[#allocation8 + $0x2b8] sm:$0xff]  ;;  %p2112_p10 = por %p2111_p2, %p2110_p11 }
 0x10d   : > { %1256 = vmatpush.msra.mxu2 %v522_v36  ;;  %1279 = vmatpush.msra.mxu3 %v523_v37  ;;  %v524_v36 = vld [vmem:[#allocation8 + $0x260] sm:$0xff]  ;;  %v525_v37 = vld [vmem:[#allocation8 + $0x268] sm:$0xff] }
 0x10e   : > { %1211 = vmatpush.msra.mxu0 %v512_v38  ;;  %1234 = vmatpush.msra.mxu1 %v513_v39  ;;  %p2113_p13 = pnand %p2112_p10, %p2108_p1 }
 0x10f   : > { %1257 = vmatpush.msra.mxu2 %v514_v40  ;;  %1280 = vmatpush.msra.mxu3 %v515_v41  ;;  %v526_v40 = vld [vmem:[#allocation8 + $0x270] sm:$0xff]  ;;  %v527_v41 = vld [vmem:[#allocation8 + $0x278] sm:$0xff] }
 0x110   : > { %1128 = vmatmul.f32.vlgmr.msrb.gmra.mxu0 %v2459_v0  ;;  %1151 = vmatmul.f32.vlgmr.msrb.gmra.mxu1 %v2462_v1 }
 0x111   : > { %1174 = vmatmul.f32.vlgmr.msrb.gmra.mxu2 %v2459_v0  ;;  %1197 = vmatmul.f32.vlgmr.msrb.gmra.mxu3 %v2462_v1  ;;  %v481_v0 = vld [vmem:[#allocation8 + $0x108] sm:$0xff]  ;;  %v482_v1 = vld [vmem:[#allocation8 + $0x110] sm:$0xff] }
 0x112   : > { %1212 = vmatpush.msra.mxu0 %v504_v42  ;;  %1235 = vmatpush.msra.mxu1 %v505_v43  ;;  %v516_v43 = vld [vmem:[#allocation8 + $0x220] sm:$0xff] }
 0x113   : > { %1258 = vmatpush.msra.mxu2 %v506_v44  ;;  %1281 = vmatpush.msra.mxu3 %v507_v45  ;;  %v517_v44 = vld [vmem:[#allocation8 + $0x228] sm:$0xff]  ;;  %v518_v45 = vld [vmem:[#allocation8 + $0x230] sm:$0xff] }
 0x114   : > { %1213 = vmatpush.msra.mxu0 %v496_v46  ;;  %1236 = vmatpush.msra.mxu1 %v497_v47  ;;  %v519_v46 = vld [vmem:[#allocation8 + $0x238] sm:$0xff]  ;;  %v508_v47 = vld [vmem:[#allocation8 + $0x1e0] sm:$0xff] }
 0x115   : > { %1259 = vmatpush.msra.mxu2 %v498_v48  ;;  %1282 = vmatpush.msra.mxu3 %v499_v49  ;;  %v509_v48 = vld [vmem:[#allocation8 + $0x1e8] sm:$0xff]  ;;  %v510_v49 = vld [vmem:[#allocation8 + $0x1f0] sm:$0xff] }
 0x116   : > { %1214 = vmatpush.msra.mxu0 %v488_v52  ;;  %1237 = vmatpush.msra.mxu1 %v489_v53  ;;  %v511_v52 = vld [vmem:[#allocation8 + $0x1f8] sm:$0xff]  ;;  %v500_v53 = vld [vmem:[#allocation8 + $0x1a0] sm:$0xff] }
 0x117   : > { %1260 = vmatpush.msra.mxu2 %v490_v54  ;;  %1283 = vmatpush.msra.mxu3 %v491_v55  ;;  %v501_v54 = vld [vmem:[#allocation8 + $0x1a8] sm:$0xff]  ;;  %v502_v55 = vld [vmem:[#allocation8 + $0x1b0] sm:$0xff] }
 0x118   : > { %1215 = vmatpush.msra.mxu0 %v480_v56  ;;  %1238 = vmatpush.msra.mxu1 %v481_v0  ;;  %v503_v56 = vld [vmem:[#allocation8 + $0x1b8] sm:$0xff] }
 0x119   : > { %1261 = vmatpush.msra.mxu2 %v482_v1  ;;  %1284 = vmatpush.msra.mxu3 %v483_v57  ;;  %v492_v57 = vld [vmem:[#allocation8 + $0x160] sm:$0xff] }
 0x11a   : > { %1131 = vmatmul.f32.gmra.mxu0 %v2469_v50  ;;  %1154 = vmatmul.f32.gmra.mxu1 %v2472_v51 }
 0x11b   : > { %1177 = vmatmul.f32.gmra.mxu2 %v2469_v50  ;;  %1200 = vmatmul.f32.gmra.mxu3 %v2472_v51  ;;  %v448_v50 = vld [vmem:[#allocation8] sm:$0xff]  ;;  %v450_v51 = vld [vmem:[#allocation8 + $0x10] sm:$0xff] }
 0x11c   : > { %1216 = vmatpush.msra.mxu0 %v472_v58  ;;  %1239 = vmatpush.msra.mxu1 %v473_v59  ;;  %v493_v58 = vld [vmem:[#allocation8 + $0x168] sm:$0xff] }
 0x11d   : > { %1262 = vmatpush.msra.mxu2 %v474_v60  ;;  %1285 = vmatpush.msra.mxu3 %v475_v61  ;;  %v494_v60 = vld [vmem:[#allocation8 + $0x170] sm:$0xff]  ;;  %v495_v61 = vld [vmem:[#allocation8 + $0x178] sm:$0xff] }
 0x11e   : > { %1217 = vmatpush.msra.mxu0 %v464_v62  ;;  %1240 = vmatpush.msra.mxu1 %v465_v63  ;;  %v484_v62 = vld [vmem:[#allocation8 + $0x120] sm:$0xff]  ;;  %v485_v63 = vld [vmem:[#allocation8 + $0x128] sm:$0xff] }
 0x11f   : > { %1263 = vmatpush.msra.mxu2 %v466_v2  ;;  %1286 = vmatpush.msra.mxu3 %v467_v3  ;;  %v486_v2 = vld [vmem:[#allocation8 + $0x130] sm:$0xff]  ;;  %v487_v3 = vld [vmem:[#allocation8 + $0x138] sm:$0xff] }
 0x120   : > { %1218 = vmatpush.msra.mxu0 %v456_v4  ;;  %1241 = vmatpush.msra.mxu1 %v457_v5  ;;  %v476_v4 = vld [vmem:[#allocation8 + $0xe0] sm:$0xff]  ;;  %v477_v5 = vld [vmem:[#allocation8 + $0xe8] sm:$0xff] }
 0x121   : > { %1264 = vmatpush.msra.mxu2 %v458_v6  ;;  %1287 = vmatpush.msra.mxu3 %v459_v7  ;;  %v478_v6 = vld [vmem:[#allocation8 + $0xf0] sm:$0xff]  ;;  %v479_v7 = vld [vmem:[#allocation8 + $0xf8] sm:$0xff] }
 0x122   : > { %1219 = vmatpush.msra.mxu0 %v448_v50  ;;  %1242 = vmatpush.msra.mxu1 %v449_v8  ;;  %v468_v50 = vld [vmem:[#allocation8 + $0xa0] sm:$0xff]  ;;  %v469_v8 = vld [vmem:[#allocation8 + $0xa8] sm:$0xff] }
 0x123   : > { %1265 = vmatpush.msra.mxu2 %v450_v51  ;;  %1288 = vmatpush.msra.mxu3 %v451_v9  ;;  %v470_v51 = vld [vmem:[#allocation8 + $0xb0] sm:$0xff]  ;;  %v471_v9 = vld [vmem:[#allocation8 + $0xb8] sm:$0xff] }
 0x124   : > { %1220 = vmatmul.f32.vlgmr.msra.gmra.mxu0 %v2503_v10  ;;  %1243 = vmatmul.f32.vlgmr.msra.gmra.mxu1 %v2503_v10 }
 0x125   : > { %1266 = vmatmul.f32.vlgmr.msra.gmra.mxu2 %v2503_v10  ;;  %1289 = vmatmul.f32.vlgmr.msra.gmra.mxu3 %v2503_v10 }
 0x126   : > { %1296 = vmatpush.msrb.mxu0 %v572_v11  ;;  %1319 = vmatpush.msrb.mxu1 %v573_v12  ;;  %v460_v11 = vld [vmem:[#allocation8 + $0x60] sm:$0xff]  ;;  %v461_v12 = vld [vmem:[#allocation8 + $0x68] sm:$0xff] }
 0x127   : > { %1342 = vmatpush.msrb.mxu2 %v574_v13  ;;  %1365 = vmatpush.msrb.mxu3 %v575_v14  ;;  %v462_v13 = vld [vmem:[#allocation8 + $0x70] sm:$0xff]  ;;  %v463_v14 = vld [vmem:[#allocation8 + $0x78] sm:$0xff] }
 0x128   : > { %1297 = vmatpush.msrb.mxu0 %v564_v15  ;;  %1320 = vmatpush.msrb.mxu1 %v565_v16  ;;  %v452_v15 = vld [vmem:[#allocation8 + $0x20] sm:$0xff]  ;;  %v453_v16 = vld [vmem:[#allocation8 + $0x28] sm:$0xff] }
 0x129   : > { %1343 = vmatpush.msrb.mxu2 %v566_v17  ;;  %1366 = vmatpush.msrb.mxu3 %v567_v18  ;;  %v454_v17 = vld [vmem:[#allocation8 + $0x30] sm:$0xff]  ;;  %v455_v18 = vld [vmem:[#allocation8 + $0x38] sm:$0xff] }
 0x12a   : > { %1298 = vmatpush.msrb.mxu0 %v556_v19  ;;  %1321 = vmatpush.msrb.mxu1 %v557_v20 }
 0x12b   : > { %1344 = vmatpush.msrb.mxu2 %v558_v21  ;;  %1367 = vmatpush.msrb.mxu3 %v559_v22 }
 0x12c   : > { %1299 = vmatpush.msrb.mxu0 %v548_v23  ;;  %1322 = vmatpush.msrb.mxu1 %v549_v24 }
 0x12d   : > { %1345 = vmatpush.msrb.mxu2 %v550_v25  ;;  %1368 = vmatpush.msrb.mxu3 %v551_v26 }
 0x12e   : > { %1223 = vmatmul.f32.gmra.mxu0 %v2510_v27  ;;  %1246 = vmatmul.f32.gmra.mxu1 %v2510_v27 }
 0x12f   : > { %1269 = vmatmul.f32.gmra.mxu2 %v2510_v27  ;;  %1292 = vmatmul.f32.gmra.mxu3 %v2510_v27 }
 0x130   : > { %1300 = vmatpush.msrb.mxu0 %v540_v28  ;;  %1323 = vmatpush.msrb.mxu1 %v541_v29 }
 0x131   : > { %1346 = vmatpush.msrb.mxu2 %v542_v30  ;;  %1369 = vmatpush.msrb.mxu3 %v543_v31  ;;  %v853_v38 = vpop.f32.mrf.mxu0  ;;  %v876_v39 = vpop.f32.mrf.mxu1 }
 0x132   : > { %1301 = vmatpush.msrb.mxu0 %v532_v32  ;;  %1324 = vmatpush.msrb.mxu1 %v533_v33  ;;  %v2516_v42 = vadd.f32 %v876_v39, %v853_v38 }
 0x133   : > { %1347 = vmatpush.msrb.mxu2 %v534_v34  ;;  %1370 = vmatpush.msrb.mxu3 %v535_v35 }
 0x134   : > { %1302 = vmatpush.msrb.mxu0 %v524_v36  ;;  %1325 = vmatpush.msrb.mxu1 %v525_v37 }
 0x135   : > { %1348 = vmatpush.msrb.mxu2 %v526_v40  ;;  %1371 = vmatpush.msrb.mxu3 %v527_v41 }
 0x136   : > { %1303 = vmatpush.msrb.mxu0 %v516_v43  ;;  %1326 = vmatpush.msrb.mxu1 %v517_v44 }
 0x137   : > { %1349 = vmatpush.msrb.mxu2 %v518_v45  ;;  %1372 = vmatpush.msrb.mxu3 %v519_v46 }
 0x138   : > { %1304 = vmatpush.msrb.mxu0 %v508_v47  ;;  %1327 = vmatpush.msrb.mxu1 %v509_v48  ;;  %v899_v0 = vpop.f32.mrf.mxu2  ;;  %v922_v1 = vpop.f32.mrf.mxu3 }
 0x139   : > { %1350 = vmatpush.msrb.mxu2 %v510_v49  ;;  %1373 = vmatpush.msrb.mxu3 %v511_v52  ;;  %v2518_v59 = vadd.f32 %v922_v1, %v899_v0  ;;  %v2552_v52 = vld [vmem:[#allocation11] sm:$0xff] }
 0x13a   : > { %1305 = vmatpush.msrb.mxu0 %v500_v53  ;;  %1328 = vmatpush.msrb.mxu1 %v501_v54  ;;  %v1390_v0 = vperm.slane %v2552_v52, 0 }
 0x13b   : > { %1351 = vmatpush.msrb.mxu2 %v502_v55  ;;  %1374 = vmatpush.msrb.mxu3 %v503_v56 }
 0x13c   : > { %1306 = vmatpush.msrb.mxu0 %v492_v57  ;;  %1329 = vmatpush.msrb.mxu1 %v493_v58  ;;  %v1391_v57 = vperm.slane %v2552_v52, 1 }
 0x13d   : > { %1352 = vmatpush.msrb.mxu2 %v494_v60  ;;  %1375 = vmatpush.msrb.mxu3 %v495_v61 }
 0x13e   : > { %1307 = vmatpush.msrb.mxu0 %v484_v62  ;;  %1330 = vmatpush.msrb.mxu1 %v485_v63  ;;  %v1392_v62 = vperm.slane %v2552_v52, 2 }
 0x13f   : > { %1353 = vmatpush.msrb.mxu2 %v486_v2  ;;  %1376 = vmatpush.msrb.mxu3 %v487_v3  ;;  %v1393_v3 = vperm.slane %v2552_v52, 3 }
 0x140   : > { %1308 = vmatpush.msrb.mxu0 %v476_v4  ;;  %1331 = vmatpush.msrb.mxu1 %v477_v5 }
 0x141   : > { %1354 = vmatpush.msrb.mxu2 %v478_v6  ;;  %1377 = vmatpush.msrb.mxu3 %v479_v7 }
 0x142   : > { %1309 = vmatpush.msrb.mxu0 %v468_v50  ;;  %1332 = vmatpush.msrb.mxu1 %v469_v8 }
 0x143   : > { %1355 = vmatpush.msrb.mxu2 %v470_v51  ;;  %1378 = vmatpush.msrb.mxu3 %v471_v9 }
 0x144   : > { %1310 = vmatpush.msrb.mxu0 %v460_v11  ;;  %1333 = vmatpush.msrb.mxu1 %v461_v12 }
 0x145   : > { %1356 = vmatpush.msrb.mxu2 %v462_v13  ;;  %1379 = vmatpush.msrb.mxu3 %v463_v14 }
 0x146   : > { %1311 = vmatpush.msrb.mxu0 %v452_v15  ;;  %1334 = vmatpush.msrb.mxu1 %v453_v16 }
 0x147   : > { %1357 = vmatpush.msrb.mxu2 %v454_v17  ;;  %1380 = vmatpush.msrb.mxu3 %v455_v18 }
 0x148   : > { %1312 = vmatmul.f32.vlgmr.msrb.gmra.mxu0 %v2503_v10  ;;  %1335 = vmatmul.f32.vlgmr.msrb.gmra.mxu1 %v2503_v10 }
 0x149   : > { %1358 = vmatmul.f32.vlgmr.msrb.gmra.mxu2 %v2503_v10  ;;  %1381 = vmatmul.f32.vlgmr.msrb.gmra.mxu3 %v2503_v10 }
 0x14b   : > { %v856_v19 = vpop.f32.mrf.mxu0  ;;  %v879_v20 = vpop.f32.mrf.mxu1 }
 0x14c   : > { %v880_v21 = vadd.f32 %v879_v20, %v856_v19 }
 0x150   : > { %1315 = vmatmul.f32.gmra.mxu0 %v2510_v27  ;;  %1338 = vmatmul.f32.gmra.mxu1 %v2510_v27 }
 0x151   : > { %1361 = vmatmul.f32.gmra.mxu2 %v2510_v27  ;;  %1384 = vmatmul.f32.gmra.mxu3 %v2510_v27 }
 0x152   : > { %v902_v22 = vpop.f32.mrf.mxu2  ;;  %v925_v23 = vpop.f32.mrf.mxu3 }
 0x153   : > { %v926_v24 = vadd.f32 %v925_v23, %v902_v22 }
 0x155   : > { %v945_v25 = vpop.f32.mrf.mxu0  ;;  %v968_v28 = vpop.f32.mrf.mxu1 }
 0x156   : > { %v969_v55 = vadd.f32 %v968_v28, %v945_v25  ;;  %v1394_v25 = vperm.slane %v2552_v52, 4 }
 0x15c   : > { %v991_v26 = vpop.f32.mrf.mxu2  ;;  %v1014_v29 = vpop.f32.mrf.mxu3 }
 0x15d   : > { %v1015_v60 = vadd.f32 %v1014_v29, %v991_v26 }
 0x16d   : > { %v948_v30 = vpop.f32.mrf.mxu0  ;;  %v971_v31 = vpop.f32.mrf.mxu1 }
 0x174   : > { %v994_v10 = vpop.f32.mrf.mxu2  ;;  %v1017_v32 = vpop.f32.mrf.mxu3 }
 0x175   : > { %v1018_v16 = vadd.f32 %v1017_v32, %v994_v10 }
 0x177   : > { %v1037_v33 = vpop.f32.mrf.mxu0  ;;  %v1060_v35 = vpop.f32.mrf.mxu1 }
 0x178   : > { %v1061_v19 = vadd.f32 %v1060_v35, %v1037_v33 }
 0x17e   : > { %v1083_v34 = vpop.f32.mrf.mxu2  ;;  %v1106_v36 = vpop.f32.mrf.mxu3 }
 0x17f   : > { %v1107_v22 = vadd.f32 %v1106_v36, %v1083_v34 }
 0x183   : > { %v2528_v37 = vpop.f32.mrf.mxu0  ;;  %v2532_v27 = vpop.f32.mrf.mxu1 }
 0x18a   : > { %v2530_v38 = vpop.f32.mrf.mxu2  ;;  %v2534_v39 = vpop.f32.mrf.mxu3 }
 0x18d   : > { %v2536_v40 = vpop.f32.mrf.mxu0  ;;  %v2540_v43 = vpop.f32.mrf.mxu1 }
 0x18e   : > { %v1153_v36 = vadd.f32 %v2540_v43, %v2536_v40 }
 0x194   : > { %v2538_v41 = vpop.f32.mrf.mxu2  ;;  %v2542_v44 = vpop.f32.mrf.mxu3 }
 0x197   : > { %v2544_v45 = vpop.f32.mrf.mxu0  ;;  %v2548_v47 = vpop.f32.mrf.mxu1 }
 0x19e   : > { %v2546_v46 = vpop.f32.mrf.mxu2  ;;  %v2550_v48 = vpop.f32.mrf.mxu3 }
 0x1a1   : > { %v1221_v49 = vpop.f32.mrf.mxu0  ;;  %v1244_v54 = vpop.f32.mrf.mxu1 }
 0x1a2   : > { %v1222_v56 = vadd.f32 %v1221_v49, %v2516_v42  ;;  %v1245_v1 = vadd.f32 %v1244_v54, %v2518_v59  ;;  %v972_v42 = vadd.f32 %v971_v31, %v948_v30 }
 0x1a4   : > { %v1406_v63 = vadd.f32 %v1390_v0, %v1222_v56  ;;  %v1407_v4 = vadd.f32 %v1391_v57, %v1245_v1  ;;  %v1199_v56 = vadd.f32 %v2542_v44, %v2538_v41  ;;  %v1110_v41 = vadd.f32 %v2534_v39, %v2530_v38  ;;  %v1474_v44 = vld [vmem:[%s2448_s19] sm:$0xff] }
 0x1a5   : > { %v1156_v38 = vadd.f32 %v2548_v47, %v2544_v45 }
 0x1a6   : > { %v1422_v50 = vmul.f32 0.5, %v1406_v63  ;;  %v1423_v51 = vmul.f32 0.5, %v1407_v4 }
 0x1a8   : > { %v1267_v53 = vpop.f32.mrf.mxu2  ;;  %v1290_v58 = vpop.f32.mrf.mxu3  ;;  %1869 = vtanh.f32 %v1422_v50 }
 0x1a9   : > { %v1268_v61 = vadd.f32 %v1267_v53, %v969_v55  ;;  %v1291_v2 = vadd.f32 %v1290_v58, %v1015_v60  ;;  %1871 = vtanh.f32 %v1423_v51  ;;  %v1396_v58 = vperm.slane %v2552_v52, 6 }
 0x1aa   : > { %v1397_v60 = vperm.slane %v2552_v52, 7 }
 0x1ab   : > { %v1408_v5 = vadd.f32 %v1392_v62, %v1268_v61  ;;  %v1224_v6 = vpop.f32.mrf.mxu0  ;;  %v1409_v8 = vadd.f32 %v1393_v3, %v1291_v2  ;;  %v1247_v11 = vpop.f32.mrf.mxu1  ;;  %v1064_v61 = vadd.f32 %v2532_v27, %v2528_v37  ;;  %v1475_v37 = vld [vmem:[%s2448_s19 + $0x8] sm:$0xff] }
 0x1ac   : > { %v1225_v59 = vadd.f32 %v1224_v6, %v880_v21  ;;  %v1248_v17 = vadd.f32 %v1247_v11, %v926_v24  ;;  %v1395_v21 = vperm.slane %v2552_v52, 5 }
 0x1ad   : > { %v1438_v9 = vmul.f32 0.5, %v1408_v5  ;;  %v1439_v13 = vmul.f32 0.5, %v1409_v8 }
 0x1ae   : > { %v1414_v14 = vadd.f32 %v1390_v0, %v1225_v59  ;;  %v1870_v26 = vpop.eup %1869  ;;  %v1415_v28 = vadd.f32 %v1391_v57, %v1248_v17 }
 0x1af   : > { %1873 = vtanh.f32 %v1438_v9  ;;  %v1872_v49 = vpop.eup %1871  ;;  %v1430_v54 = vmul.f32 0.5, %v1870_v26 }
 0x1b0   : > { %1875 = vtanh.f32 %v1439_v13  ;;  %v1424_v23 = vmul.f32 0.5, %v1414_v14  ;;  %v1425_v55 = vmul.f32 0.5, %v1415_v28  ;;  %v1431_v0 = vmul.f32 0.5, %v1872_v49 }
 0x1b2   : > { %v1270_v7 = vpop.f32.mrf.mxu2  ;;  %v1293_v15 = vpop.f32.mrf.mxu3  ;;  %1877 = vtanh.f32 %v1424_v23 }
 0x1b3   : > { %v1271_v12 = vadd.f32 %v1270_v7, %v972_v42  ;;  %v1294_v20 = vadd.f32 %v1293_v15, %v1018_v16  ;;  %v1435_v7 = vadd.f32 0.5, %v1431_v0 }
 0x1b5   : > { %v1416_v18 = vadd.f32 %v1392_v62, %v1271_v12  ;;  %v1874_v32 = vpop.eup %1873  ;;  %v1417_v24 = vadd.f32 %v1393_v3, %v1294_v20  ;;  %v1434_v62 = vadd.f32 0.5, %v1430_v54 }
 0x1b6   : > { %v1876_v35 = vpop.eup %1875  ;;  %v1446_v1 = vmul.f32 0.5, %v1874_v32 }
 0x1b7   : > { %v1440_v29 = vmul.f32 0.5, %v1416_v18  ;;  %v1441_v57 = vmul.f32 0.5, %v1417_v24  ;;  %v1447_v40 = vmul.f32 0.5, %v1876_v35  ;;  %v1478_v39 = vmul.f32 %v1474_v44, %v1434_v62 }
 0x1b8   : > { %v1878_v6 = vpop.eup %1877  ;;  %v1450_v42 = vadd.f32 0.5, %v1446_v1  ;;  %v1202_v18 = vadd.f32 %v2550_v48, %v2546_v46  ;;  %v1477_v1 = vld [vmem:[%s2448_s19 + $0x18] sm:$0xff] }
 0x1b9   : > { %1879 = vtanh.f32 %v1440_v29  ;;  %v1451_v11 = vadd.f32 0.5, %v1447_v40  ;;  %v1432_v14 = vmul.f32 0.5, %v1878_v6 }
 0x1bf   : > { %v1880_v8 = vpop.eup %1879 }
 0x1c0   : > { %v1448_v23 = vmul.f32 0.5, %v1880_v8 }
 0x1c2   : > { %v1452_v52 = vadd.f32 0.5, %v1448_v23 }
 0x1c5   : > { %v1313_v30 = vpop.f32.mrf.mxu0  ;;  %v1336_v31 = vpop.f32.mrf.mxu1 }
 0x1c6   : > { %v1314_v53 = vadd.f32 %v1313_v30, %v1061_v19  ;;  %v1337_v10 = vadd.f32 %v1336_v31, %v1107_v22  ;;  %v1479_v19 = vmul.f32 %v1475_v37, %v1435_v7  ;;  %v1436_v30 = vadd.f32 0.5, %v1432_v14  ;;  %v1476_v31 = vld [vmem:[%s2448_s19 + $0x10] sm:$0xff] }
 0x1c8   : > { %v1410_v33 = vadd.f32 %v1394_v25, %v1314_v53  ;;  %v1411_v34 = vadd.f32 %v1395_v21, %v1337_v10  ;;  %v1480_v54 = vmul.f32 %v1476_v31, %v1436_v30 }
 0x1ca   : > { %1881 = vtanh.f32 %v1410_v33 }
 0x1cb   : > { %1883 = vtanh.f32 %v1411_v34 }
 0x1cc   : > { %v1359_v43 = vpop.f32.mrf.mxu2  ;;  %v1382_v63 = vpop.f32.mrf.mxu3  ;;  %1885 = vtanh.f32 %v1425_v55 }
 0x1cd   : > { %v1360_v2 = vadd.f32 %v1359_v43, %v1153_v36  ;;  %v1383_v3 = vadd.f32 %v1382_v63, %v1199_v56  ;;  %v1316_v4 = vpop.f32.mrf.mxu0  ;;  %v1339_v5 = vpop.f32.mrf.mxu1  ;;  %1887 = vtanh.f32 %v1441_v57 }
 0x1ce   : > { %v1317_v50 = vadd.f32 %v1316_v4, %v1064_v61  ;;  %v1340_v59 = vadd.f32 %v1339_v5, %v1110_v41 }
 0x1cf   : > { %v1412_v27 = vadd.f32 %v1396_v58, %v1360_v2  ;;  %v1413_v51 = vadd.f32 %v1397_v60, %v1383_v3 }
 0x1d0   : > { %v1882_v9 = vpop.eup %1881  ;;  %v1418_v12 = vadd.f32 %v1394_v25, %v1317_v50  ;;  %v1419_v45 = vadd.f32 %v1395_v21, %v1340_v59 }
 0x1d1   : > { %v1884_v13 = vpop.eup %1883  ;;  %v1482_v15 = vmul.f32 %v1882_v9, %v1450_v42  ;;  %v1458_v16 = vmul.f32 0.5, %v1412_v27  ;;  %v1459_v17 = vmul.f32 0.5, %v1413_v51 }
 0x1d2   : > { %v1483_v20 = vmul.f32 %v1884_v13, %v1451_v11  ;;  %1889 = vtanh.f32 %v1418_v12  ;;  %v1886_v22 = vpop.eup %1885 }
 0x1d3   : > { %v1486_v26 = vadd.f32 %v1482_v15, %v1478_v39  ;;  %1891 = vtanh.f32 %v1458_v16  ;;  %v1888_v29 = vpop.eup %1887  ;;  %v1433_v49 = vmul.f32 0.5, %v1886_v22 }
 0x1d4   : > { %v1487_v47 = vadd.f32 %v1483_v20, %v1479_v19  ;;  %1893 = vtanh.f32 %v1459_v17  ;;  %v1362_v25 = vpop.f32.mrf.mxu2  ;;  %v1385_v28 = vpop.f32.mrf.mxu3  ;;  %v1449_v32 = vmul.f32 0.5, %v1888_v29 }
 0x1d5   : > { %1895 = vtanh.f32 %v1486_v26  ;;  %1502 = vst [vmem:[%s2583_s30] sm:$0xff] %v1486_v26  ;;  %v1363_v46 = vadd.f32 %v1362_v25, %v1156_v38  ;;  %v1386_v48 = vadd.f32 %v1385_v28, %v1202_v18  ;;  %v1437_v55 = vadd.f32 0.5, %v1433_v49 }
 0x1d6   : > { %1897 = vtanh.f32 %v1487_v47  ;;  %1503 = vst [vmem:[%s2583_s30 + $0x8] sm:$0xff] %v1487_v47  ;;  %v1453_v61 = vadd.f32 0.5, %v1449_v32 }
 0x1d7   : > { %1899 = vtanh.f32 %v1419_v45  ;;  %v1420_v21 = vadd.f32 %v1396_v58, %v1363_v46  ;;  %v1421_v53 = vadd.f32 %v1397_v60, %v1386_v48  ;;  %v1481_v63 = vmul.f32 %v1477_v1, %v1437_v55 }
 0x1d8   : > { %v1890_v10 = vpop.eup %1889 }
 0x1d9   : > { %v1892_v24 = vpop.eup %1891  ;;  %v1484_v33 = vmul.f32 %v1890_v10, %v1452_v52  ;;  %v1460_v34 = vmul.f32 0.5, %v1420_v21  ;;  %v1461_v35 = vmul.f32 0.5, %v1421_v53 }
 0x1da   : > { %v1894_v36 = vpop.eup %1893  ;;  %v1466_v56 = vmul.f32 0.5, %v1892_v24 }
 0x1db   : > { %v1896_v0 = vpop.eup %1895  ;;  %v1467_v57 = vmul.f32 0.5, %v1894_v36  ;;  %v1488_v58 = vadd.f32 %v1484_v33, %v1480_v54  ;;  %1901 = vtanh.f32 %v1460_v34 }
 0x1dc   : > { %v1898_v60 = vpop.eup %1897  ;;  %v1470_v62 = vadd.f32 0.5, %v1466_v56  ;;  %1903 = vtanh.f32 %v1461_v35 }
 0x1dd   : > { %v1900_v40 = vpop.eup %1899  ;;  %v1471_v43 = vadd.f32 0.5, %v1467_v57  ;;  %1905 = vtanh.f32 %v1488_v58  ;;  %1504 = vst [vmem:[%s2583_s30 + $0x10] sm:$0xff] %v1488_v58 }
 0x1de   : > { %v1494_v41 = vmul.f32 %v1896_v0, %v1470_v62  ;;  %v1485_v44 = vmul.f32 %v1900_v40, %v1453_v61 }
 0x1df   : > { %v1495_v2 = vmul.f32 %v1898_v60, %v1471_v43 }
 0x1e0   : > { %1498 = vst [vmem:[%s2598_s21] sm:$0xff] %v1494_v41  ;;  %v1489_v3 = vadd.f32 %v1485_v44, %v1481_v63 }
 0x1e1   : > { %v1902_v4 = vpop.eup %1901  ;;  %1499 = vst [vmem:[%s2598_s21 + $0x8] sm:$0xff] %v1495_v2 }
 0x1e2   : > { %v1904_v5 = vpop.eup %1903  ;;  %1907 = vtanh.f32 %v1489_v3  ;;  %1505 = vst [vmem:[%s2583_s30 + $0x18] sm:$0xff] %v1489_v3  ;;  %v1468_v6 = vmul.f32 0.5, %v1902_v4 }
 0x1e3   : > { %v1906_v7 = vpop.eup %1905  ;;  %v1469_v42 = vmul.f32 0.5, %v1904_v5 }
 0x1e4   : > { %2116 = shalt.err (!%p2113_p13)
}
 0x1e5   : > { %s2210_s12 = smov 256   ;;  %s2211_s9 = smov 16   ;;  %v1472_v50 = vadd.f32 0.5, %v1468_v6  ;;  %v1473_v8 = vadd.f32 0.5, %v1469_v42 }
 0x1e6   : > { %1788 = dma.vmem_to_hbm [thread:$0]  (%p2328_p7), %s2601_s4, 512, %s2603_s23, %s1512_s13, %s2210_s12, %s2210_s12, %s2211_s9  }
 0x1e7   : > { %v1496_v37 = vmul.f32 %v1906_v7, %v1472_v50  ;;  %s1525_s10 = sshll.u32 %s2598_s21, 4  ;;  %s1527_s19 = sshll.u32 %s1524_s17, 4  ;;  %s1526_s10 = int_to_ptr.vmem [resolvable:$true] %s1525_s10  ;;  %s1528_s19 = int_to_ptr.hbm [resolvable:$true] %s1527_s19 }
 0x1e8   : > { %v1908_v27 = vpop.eup %1907  ;;  %s1507_s30 = scalar_lea.sflag [#allocation4], %s2426_s16  ;;  %s2131_s29 = sshra.s32 %s1528_s19, 4  ;;  %s2132_s29 = int_to_ptr.hbm [resolvable:$true] %s2131_s29 }
 0x1e9   : > { %1500 = vst [vmem:[%s2598_s21 + $0x10] sm:$0xff] %v1496_v37  ;;  %v1497_v51 = vmul.f32 %v1908_v27, %v1473_v8  ;;  %s2133_s18 = scalar_lea.hbm %s2132_s29, 32  ;;  %s2137_s4 = scalar_lea.hbm %s2717_s8, 64 }
 0x1ea   : > { %p2134_p0 = scmp.ne.s32.totalorder %s2132_s29, %s2133_s18  ;;  %p2138_p12 = scmp.lt.s32.totalorder %s2132_s29, %s2717_s8 }
 0x1eb   : > { %1501 = vst [vmem:[%s2598_s21 + $0x18] sm:$0xff] %v1497_v51  ;;  %p2139_p3 = scmp.lt.s32.totalorder %s2137_s4, %s2133_s18 }
 0x1ec   : > { %p2135_p8 = pnand %p2134_p0, %p2328_p7 }
 0x1ed   : > { %p2140_p4 = por %p2139_p3, %p2138_p12 }
 0x1ee   : > { %p2136_p9 = pneg %p2135_p8 }
 0x1f0   : > { %p2141_p5 = pnand %p2140_p4, %p2136_p9 }
 0x1f2   : > { %2144 = shalt.err (!%p2141_p5)
}
 0x1f3   : > { %1787 = dma.vmem_to_hbm [thread:$0]  (%p2328_p7), %s1526_s10, 512, %s1528_s19, %s1507_s30, %s2210_s12, %s2210_s12, %s2211_s9  }
 0x1f4 PF: > { %s2718_s16 = sld [smem:[#allocation22_spill]]  ;;  %p2720_p1 = scmp.ge.s32.totalorder %s2199_s27, 2 }
 0x1f6   : > { %p1812_p11 = pnand %p2720_p1, %p2287_p6 }
 0x1f8   : > { %p1813_p2 = pneg %p1812_p11 }
 0x1fa   : > { %s1560_s1 = sand.u32 1, %s2718_s16  }
 0x1fb   : > { %s1561_s17 = scalar_lea.sflag [#allocation4], %s1560_s1 }
 0x1fc   : > { %2178 = dma.done.wait (%p1813_p2), %s1561_s17, 512  }
 0x1fd   : > { %2180 = vsyncadd (%p1813_p2), %s1561_s17, 4294966784  ;;  %s1571_s13 = scalar_lea.sflag [#allocation15], %s1560_s1 }
 0x1fe   : > { %2182 = dma.done.wait (%p1813_p2), %s1571_s13, 512  }
 0x1ff   : > { %2184 = vsyncadd (%p1813_p2), %s1571_s13, 4294966784  ;;  %s2721_s27 = sld [smem:[#allocation25_spill]]  ;;  %s2724_s24 = smov %s2191_s25 }
 0x200   : > { %s2722_s26 = sld [smem:[#allocation23_spill]] }
 0x201   : > { %s2723_s5 = sld [smem:[#allocation26_spill]] }
 0x205   : > { %p29_p7 = scmp.ge.s32.totalorder %s2721_s27, 4  }
 0x206   : > { %s2725_s25 = smov %s2722_s26 }
 0x207   : > { %s2726_s26 = smov %s2723_s5  ;;  %31 = sbr.rel (!%p29_p7) target bundleno = 17 (0x11), region = 142 }
 0x20c   :  { %1577 = vsyncpa [#allocation3], 1 }
 0x20d   :  { %1579 = vsyncpa [#allocation3 + $0x1], 1 }
 0x20e   :  { %1580 = vsyncpa [#allocation6], 1 }
 0x20f   :  { %1582 = vsyncpa [#allocation6 + $0x1], 1 }
 0x210   :  { %1583 = vsyncpa [#allocation9], 1 }
 0x211   :  { %1584 = vsyncpa [#allocation12], 1 }
 0x212   :  { %1585 = vsyncpa [#allocation4], 1 }
 0x213   :  { %1587 = vsyncpa [#allocation4 + $0x1], 1 }
 0x214   :  { %1588 = vsyncpa [#allocation15], 1 }
 0x215   :  { %1590 = vsyncpa [#allocation15 + $0x1], 1 }

</bundles_post_ra>
